<compile_context>
chip_gen: v7x
topology: tpu7x:2x2x1
jax: 0.10.0
libtpu: 0.0.40
codegen_flags: <defaults>
</compile_context>

<pallas_src>
import functools

import jax
import jax.numpy as jnp
from jax import lax
from jax.experimental import pallas as pl
from jax.experimental.pallas import tpu as pltpu


# ----------------------------- global tuning -------------------------------

_ROW_TILE = 256            # 256 is v7x-safe; 512 pays off on v5e/v6e with the limit below
_VMEM_LIMIT = 48 * 1024 * 1024   # explicit scoped-VMEM limit for every pallas_call


def _const_spec(shape):
    """BlockSpec for a grid-invariant operand (weights / biases / LN params).

    Single-buffered (pl.Buffered(1)): the block index never changes, so the
    default 2-deep pipelining would only waste VMEM.  Falls back gracefully if
    this jax version's BlockSpec does not take pipeline_mode.
    """
    nd = len(shape)
    idx = lambda *_: (0,) * nd
    try:
        return pl.BlockSpec(shape, idx, pipeline_mode=pl.Buffered(1))
    except TypeError:  # pragma: no cover - older BlockSpec signature
        return pl.BlockSpec(shape, idx)


# ----------------------------- tiling helpers ------------------------------

def _row_tile(M, target):
    """Row tile (multiple of 8, <= target, aiming for >=2 grid steps) + padded M."""
    if M >= 2 * target:
        tm = target
    else:
        tm = max(8, ((pl.cdiv(M, 2) + 7) // 8) * 8)   # >=2 steps for megacore
        tm = min(tm, target)
    Mp = pl.cdiv(M, tm) * tm
    return tm, Mp


def _pad_rows(x, Mp):
    M = x.shape[0]
    if Mp == M:
        return x
    return jnp.pad(x, ((0, Mp - M), (0, 0)))


# ----------------------------- Pallas kernels ------------------------------

def _linear_kernel(x_ref, w_ref, b_ref, o_ref):
    x = x_ref[...].astype(jnp.bfloat16)                       # bf16 MXU operand
    acc = jnp.dot(x, w_ref[...], preferred_element_type=jnp.float32) + b_ref[...]
    o_ref[...] = acc.astype(o_ref.dtype)


def pallas_linear(x, w, b, out_dtype=None, row_tile=_ROW_TILE):
    """x: [M, K]; w: [K, N] (bf16); b: [N] (f32) -> [M, N]."""
    M, K = x.shape
    N = w.shape[1]
    out_dtype = out_dtype or x.dtype
    tm, Mp = _row_tile(M, row_tile)
    xp = _pad_rows(x, Mp)
    b2 = b.reshape(1, N).astype(jnp.float32)
    out = pl.pallas_call(
        _linear_kernel,
        out_shape=jax.ShapeDtypeStruct((Mp, N), out_dtype),
        grid=(Mp // tm,),
        in_specs=[
            pl.BlockSpec((tm, K), lambda i: (i, 0)),
            _const_spec((K, N)),
            _const_spec((1, N)),
        ],
        out_specs=pl.BlockSpec((tm, N), lambda i: (i, 0)),
        compiler_params=pltpu.CompilerParams(
            dimension_semantics=("parallel",), vmem_limit_bytes=_VMEM_LIMIT),
    )(xp, w, b2)
    return out[:M] if Mp != M else out


def _linear_add_ln_kernel(y_ref, w_ref, b_ref, r_ref, g_ref, bt_ref, o_ref, *, eps):
    # LN(residual + y @ W + b) * gamma + beta; rows independent.
    y = y_ref[...].astype(jnp.bfloat16)
    h = jnp.dot(y, w_ref[...], preferred_element_type=jnp.float32) + b_ref[...]
    h = h + r_ref[...].astype(jnp.float32)
    mu = jnp.mean(h, axis=-1, keepdims=True)
    var = jnp.mean((h - mu) ** 2, axis=-1, keepdims=True)
    o_ref[...] = (((h - mu) * lax.rsqrt(var + eps)) * g_ref[...]
                  + bt_ref[...]).astype(o_ref.dtype)


def pallas_linear_add_ln(y, w, b, residual, gamma, beta, eps=1e-12, row_tile=_ROW_TILE):
    """LN(residual + y @ w + b); y: [M, K], w: [K, H] bf16, residual: [M, H] f32."""
    M, K = y.shape
    H = w.shape[1]
    tm, Mp = _row_tile(M, row_tile)
    yp = _pad_rows(y, Mp)
    rp = _pad_rows(residual, Mp)
    b2 = b.reshape(1, H).astype(jnp.float32)
    g2 = gamma.reshape(1, H).astype(jnp.float32)
    bt2 = beta.reshape(1, H).astype(jnp.float32)
    kern = functools.partial(_linear_add_ln_kernel, eps=eps)
    out = pl.pallas_call(
        kern,
        out_shape=jax.ShapeDtypeStruct((Mp, H), residual.dtype),
        grid=(Mp // tm,),
        in_specs=[
            pl.BlockSpec((tm, K), lambda i: (i, 0)),
            _const_spec((K, H)),
            _const_spec((1, H)),
            pl.BlockSpec((tm, H), lambda i: (i, 0)),
            _const_spec((1, H)),
            _const_spec((1, H)),
        ],
        out_specs=pl.BlockSpec((tm, H), lambda i: (i, 0)),
        compiler_params=pltpu.CompilerParams(
            dimension_semantics=("parallel",), vmem_limit_bytes=_VMEM_LIMIT),
    )(yp, w, b2, rp, g2, bt2)
    return out[:M] if Mp != M else out


def _ffn_ln_kernel(x_ref, w1_ref, b1_ref, w2_ref, b2_ref, g_ref, bt_ref, o_ref, *, eps):
    # LN(x + GELU(x@W1+b1)@W2 + b2): the [tm, I] intermediate stays on-chip.
    x = x_ref[...].astype(jnp.float32)
    h1 = jnp.dot(x.astype(jnp.bfloat16), w1_ref[...],
                 preferred_element_type=jnp.float32) + b1_ref[...]
    # exact (erf) GELU for parity with the reference model.
    h1 = 0.5 * h1 * (1.0 + lax.erf(h1 * 0.7071067811865476))
    h2 = jnp.dot(h1.astype(jnp.bfloat16), w2_ref[...],
                 preferred_element_type=jnp.float32) + b2_ref[...]
    h = h2 + x
    mu = jnp.mean(h, axis=-1, keepdims=True)
    var = jnp.mean((h - mu) ** 2, axis=-1, keepdims=True)
    o_ref[...] = (((h - mu) * lax.rsqrt(var + eps)) * g_ref[...]
                  + bt_ref[...]).astype(o_ref.dtype)


def pallas_ffn_ln(x, w1, b1, w2, b2, gamma, beta, eps=1e-12, row_tile=_ROW_TILE):
    """Fused FFN + residual + LN: x: [M, H] f32, w1: [H, I] bf16, w2: [I, H] bf16."""
    M, H = x.shape
    I = w1.shape[1]
    tm, Mp = _row_tile(M, row_tile)
    xp = _pad_rows(x, Mp)
    b1r = b1.reshape(1, I).astype(jnp.float32)
    b2r = b2.reshape(1, H).astype(jnp.float32)
    g2 = gamma.reshape(1, H).astype(jnp.float32)
    bt2 = beta.reshape(1, H).astype(jnp.float32)
    kern = functools.partial(_ffn_ln_kernel, eps=eps)
    out = pl.pallas_call(
        kern,
        out_shape=jax.ShapeDtypeStruct((Mp, H), x.dtype),
        grid=(Mp // tm,),
        in_specs=[
            pl.BlockSpec((tm, H), lambda i: (i, 0)),
            _const_spec((H, I)),
            _const_spec((1, I)),
            _const_spec((I, H)),
            _const_spec((1, H)),
            _const_spec((1, H)),
            _const_spec((1, H)),
        ],
        out_specs=pl.BlockSpec((tm, H), lambda i: (i, 0)),
        compiler_params=pltpu.CompilerParams(
            dimension_semantics=("parallel",), vmem_limit_bytes=_VMEM_LIMIT),
    )(xp, w1, b1r, w2, b2r, g2, bt2)
    return out[:M] if Mp != M else out


def _layernorm_kernel(x_ref, g_ref, b_ref, o_ref, *, eps):
    x = x_ref[...].astype(jnp.float32)
    mu = jnp.mean(x, axis=-1, keepdims=True)
    var = jnp.mean((x - mu) ** 2, axis=-1, keepdims=True)
    o_ref[...] = (((x - mu) * lax.rsqrt(var + eps)) * g_ref[...]
                  + b_ref[...]).astype(o_ref.dtype)


def pallas_layernorm(x, gamma, beta, eps=1e-12, row_tile=512):
    """x: [M, H]; gamma/beta: [H] -> [M, H]."""
    M, H = x.shape
    tm, Mp = _row_tile(M, row_tile)
    xp = _pad_rows(x, Mp)
    g2 = gamma.reshape(1, H).astype(jnp.float32)
    b2 = beta.reshape(1, H).astype(jnp.float32)
    kern = functools.partial(_layernorm_kernel, eps=eps)
    out = pl.pallas_call(
        kern,
        out_shape=jax.ShapeDtypeStruct((Mp, H), x.dtype),
        grid=(Mp // tm,),
        in_specs=[
            pl.BlockSpec((tm, H), lambda i: (i, 0)),
            _const_spec((1, H)),
            _const_spec((1, H)),
        ],
        out_specs=pl.BlockSpec((tm, H), lambda i: (i, 0)),
        compiler_params=pltpu.CompilerParams(
            dimension_semantics=("parallel",), vmem_limit_bytes=_VMEM_LIMIT),
    )(xp, g2, b2)
    return out[:M] if Mp != M else out


# --------------------------- attention kernels ------------------------------

def _head_attn(q, k, v, m, scale):
    """One head: q,k,v [S, dh] bf16; m [1, S] additive mask; returns [S, dh] f32."""
    # contract on the head dim of both operands -> no in-kernel k.T / XLU transpose
    s = lax.dot_general(q, k, (((1,), (1,)), ((), ())),
                        preferred_element_type=jnp.float32) * scale + m
    s = s - jnp.max(s, axis=-1, keepdims=True)
    p = jnp.exp(s)
    p = p / jnp.sum(p, axis=-1, keepdims=True)        # exact divide (parity w/ torch)
    return jnp.dot(p.astype(v.dtype), v, preferred_element_type=jnp.float32)


def _attention_group_kernel(q_ref, k_ref, v_ref, m_ref, o_ref, *, scale, dh, hpb):
    # q/k/v refs: [S, hpb*dh] column blocks of the QKV slab; o_ref: [S, hpb*dh].
    m = m_ref[0].astype(jnp.float32)                   # [1, S]
    outs = []
    for hh in range(hpb):
        sl = pl.ds(hh * dh, dh)
        outs.append(_head_attn(q_ref[:, sl], k_ref[:, sl], v_ref[:, sl], m, scale))
    o = outs[0] if hpb == 1 else jnp.concatenate(outs, axis=-1)
    o_ref[...] = o.astype(o_ref.dtype)                 # single lane-dense store


def _attention_slab_kernel(qkv_ref, m_ref, o_ref, *, scale, dh, nh, hidden):
    # Fallback for configs where no head group reaches 128 lanes:
    # qkv_ref: [S, 3H] (full last dim), o_ref: [S, H] (full last dim).
    m = m_ref[0].astype(jnp.float32)
    outs = []
    for hh in range(nh):
        q = qkv_ref[:, pl.ds(hh * dh, dh)]
        k = qkv_ref[:, pl.ds(hidden + hh * dh, dh)]
        v = qkv_ref[:, pl.ds(2 * hidden + hh * dh, dh)]
        outs.append(_head_attn(q, k, v, m, scale))
    o = outs[0] if nh == 1 else jnp.concatenate(outs, axis=-1)
    o_ref[...] = o.astype(o_ref.dtype)


def pallas_attention(qkv, add_mask, *, batch, seq, hidden, nh, dh, scale):
    """qkv: [B*S, 3H] bf16 (batch-major rows); add_mask: [B, 1, S] additive f32.

    Reads q/k/v directly out of the fused slab via index maps and writes the
    context straight into [B*S, H] (no XLA transposes, lane-dense output).
    """
    # TODO(synk): for very long sequences tile the q/k axes with an online softmax.
    hpb = 0
    for cand in range(1, nh + 1):                      # smallest lane-aligned head group
        if nh % cand == 0 and (cand * dh) % 128 == 0:
            hpb = cand
            break

    if hpb:                                            # lane-dense grouped path
        gw = hpb * dh                                  # multiple of 128
        ng = nh // hpb
        qb = hidden // gw                              # gw-blocks per H segment
        kern = functools.partial(_attention_group_kernel, scale=scale, dh=dh, hpb=hpb)
        return pl.pallas_call(
            kern,
            out_shape=jax.ShapeDtypeStruct((batch * seq, hidden), qkv.dtype),
            grid=(batch, ng),
            in_specs=[
                pl.BlockSpec((seq, gw), lambda b, g: (b, g)),            # Q columns
                pl.BlockSpec((seq, gw), lambda b, g: (b, qb + g)),       # K columns
                pl.BlockSpec((seq, gw), lambda b, g: (b, 2 * qb + g)),   # V columns
                pl.BlockSpec((1, 1, seq), lambda b, g: (b, 0, 0)),
            ],
            out_specs=pl.BlockSpec((seq, gw), lambda b, g: (b, g)),
            compiler_params=pltpu.CompilerParams(
                dimension_semantics=("parallel", "parallel"),
                vmem_limit_bytes=_VMEM_LIMIT),
        )(qkv, qkv, qkv, add_mask)

    # small-head fallback: one batch per grid step, full-width blocks
    kern = functools.partial(_attention_slab_kernel, scale=scale, dh=dh, nh=nh,
                             hidden=hidden)
    return pl.pallas_call(
        kern,
        out_shape=jax.ShapeDtypeStruct((batch * seq, hidden), qkv.dtype),
        grid=(batch,),
        in_specs=[
            pl.BlockSpec((seq, 3 * hidden), lambda b: (b, 0)),
            pl.BlockSpec((1, 1, seq), lambda b: (b, 0, 0)),
        ],
        out_specs=pl.BlockSpec((seq, hidden), lambda b: (b, 0)),
        compiler_params=pltpu.CompilerParams(
            dimension_semantics=("parallel",), vmem_limit_bytes=_VMEM_LIMIT),
    )(qkv, add_mask)


# --------------------------- parameters (synthetic) -------------------------

def init_params(cfg, key):
    std = 0.02
    H = cfg["hidden_size"]
    I = cfg["intermediate_size"]
    keys = iter(jax.random.split(key, 256))

    def nrm(shape, dtype=jnp.float32):
        return (std * jax.random.normal(next(keys), shape, jnp.float32)).astype(dtype)

    params = {
        "word_emb": nrm((cfg["vocab_size"], H)),
        "pos_emb": nrm((cfg["max_position_embeddings"], H)),
        "type_emb": nrm((cfg["type_vocab_size"], H)),
        "emb_ln_g": jnp.ones((H,), jnp.float32),
        "emb_ln_b": jnp.zeros((H,), jnp.float32),
        "layers": [],
        "qa_w": nrm((H, 2), jnp.bfloat16),
        "qa_b": jnp.zeros((2,), jnp.float32),
    }
    for _ in range(cfg["num_hidden_layers"]):
        params["layers"].append({
            # fused QKV weight: [H, 3H] = [Wq | Wk | Wv]
            "w_qkv": nrm((H, 3 * H), jnp.bfloat16),
            "b_qkv": jnp.zeros((3 * H,), jnp.float32),
            "wo": nrm((H, H), jnp.bfloat16), "bo": jnp.zeros((H,), jnp.float32),
            "ln1_g": jnp.ones((H,), jnp.float32), "ln1_b": jnp.zeros((H,), jnp.float32),
            "w1": nrm((H, I), jnp.bfloat16), "b1": jnp.zeros((I,), jnp.float32),
            "w2": nrm((I, H), jnp.bfloat16), "b2": jnp.zeros((H,), jnp.float32),
            "ln2_g": jnp.ones((H,), jnp.float32), "ln2_b": jnp.zeros((H,), jnp.float32),
        })
    return params


# -------------------------------- forward ----------------------------------

def _cross_entropy(logits, labels, ignore_index):
    # nn.CrossEntropyLoss(ignore_index=...), mean reduction over valid rows.
    logp = jax.nn.log_softmax(logits, axis=-1)
    valid = labels != ignore_index
    safe = jnp.where(valid, labels, 0)
    nll = -jnp.take_along_axis(logp, safe[:, None], axis=-1)[:, 0]
    nll = jnp.where(valid, nll, 0.0)
    denom = jnp.maximum(jnp.sum(valid.astype(jnp.float32)), 1.0)
    return jnp.sum(nll) / denom


def bert_qa_forward(params, input_ids, attention_mask=None, token_type_ids=None,
                    position_ids=None, start_positions=None, end_positions=None, *, cfg):
    S, B = input_ids.shape
    H = cfg["hidden_size"]
    nh = cfg["num_attention_heads"]
    dh = H // nh

    if attention_mask is None:
        attention_mask = jnp.ones((B, S), jnp.float32)

    # batch-major id tensors [B, S] (cheap int transposes, done once)
    ids_bm = input_ids.T
    tt_bm = jnp.zeros((B, S), jnp.int32) if token_type_ids is None else token_type_ids.T
    if position_ids is None:
        pos_bm = jnp.broadcast_to(jnp.arange(S, dtype=jnp.int32)[None, :], (B, S))
    else:
        pos_bm = position_ids.T

    # ---- embeddings (gathers are XLA glue; LayerNorm in Pallas) ----
    emb = (params["word_emb"][ids_bm]
           + params["pos_emb"][pos_bm]
           + params["type_emb"][tt_bm])                                  # [B, S, H]
    x = pallas_layernorm(emb.reshape(B * S, H),
                         params["emb_ln_g"], params["emb_ln_b"])         # [B*S, H] f32

    # additive attention mask, computed once (kept f32 inside the kernel)
    add_mask = ((1.0 - attention_mask.astype(jnp.float32)) * (-1e9)).reshape(B, 1, S)
    scale = 1.0 / float(dh) ** 0.5

    # NOTE: the residual stream is kept in f32 for parity with the reference
    # model (bf16 hidden states would halve HBM traffic on v5e if acceptable).
    for lyr in params["layers"]:
        # fused QKV GEMM -> [B*S, 3H] bf16 slab consumed directly by attention
        qkv = pallas_linear(x, lyr["w_qkv"], lyr["b_qkv"], out_dtype=jnp.bfloat16)
        ctx = pallas_attention(qkv, add_mask, batch=B, seq=S, hidden=H,
                               nh=nh, dh=dh, scale=scale)                # [B*S, H] bf16
        # fused output projection + residual + LayerNorm
        x = pallas_linear_add_ln(ctx, lyr["wo"], lyr["bo"], x,
                                 lyr["ln1_g"], lyr["ln1_b"])
        # fully fused FFN: LN(x + GELU(x@W1+b1)@W2 + b2), intermediate in VMEM
        x = pallas_ffn_ln(x, lyr["w1"], lyr["b1"], lyr["w2"], lyr["b2"],
                          lyr["ln2_g"], lyr["ln2_b"])

    sequence_output = x                                                  # [B*S, H]

    # ---- qa_outputs: Linear(H, 2). Pad the 2-wide output to 128 lanes so the
    #      Pallas store is lane-dense, then slice the two real columns back. ----
    qa_w = jnp.pad(params["qa_w"], ((0, 0), (0, 126)))                   # [H, 128] bf16
    qa_b = jnp.pad(params["qa_b"], (0, 126))                             # [128] f32
    logits = pallas_linear(sequence_output, qa_w, qa_b,
                           out_dtype=jnp.float32)[:, :2].reshape(B, S, 2)
    start_logits = logits[..., 0]                                        # [B, S]
    end_logits = logits[..., 1]                                          # [B, S]

    if start_positions is not None and end_positions is not None:
        ignored_index = start_logits.shape[1]
        start_positions = jnp.clip(start_positions, 0, ignored_index)
        end_positions = jnp.clip(end_positions, 0, ignored_index)
        start_loss = _cross_entropy(start_logits, start_positions, ignored_index)
        end_loss = _cross_entropy(end_logits, end_positions, ignored_index)
        return (start_loss + end_loss) / 2.0, start_logits, end_logits
    return start_logits, end_logits


# --------------------------------- main -------------------------------------

if __name__ == "__main__":
    def run_case(cfg, S, B, seed=0):
        key = jax.random.PRNGKey(seed)
        kp, ki, ks, ke = jax.random.split(key, 4)
        params = init_params(cfg, kp)

        input_ids = jax.random.randint(ki, (S, B), 0, cfg["vocab_size"], dtype=jnp.int32)
        token_type_ids = jnp.zeros((S, B), jnp.int32)
        attention_mask = jnp.ones((B, S), jnp.float32).at[1, S - 2:].set(0.0)
        start_positions = jax.random.randint(ks, (B,), 0, S, dtype=jnp.int32)
        end_positions = jax.random.randint(ke, (B,), 0, S, dtype=jnp.int32)

        fwd = jax.jit(functools.partial(bert_qa_forward, cfg=cfg))

        # with positions -> (loss, start_logits, end_logits)
        loss, start_logits, end_logits = fwd(params, input_ids, attention_mask,
                                             token_type_ids, None,
                                             start_positions, end_positions)
        # without positions -> (start_logits, end_logits)
        sl2, el2 = fwd(params, input_ids, attention_mask, token_type_ids)

        jax.block_until_ready((loss, start_logits, end_logits, sl2, el2))
        assert start_logits.shape == (B, S) and end_logits.shape == (B, S)
        assert loss.shape == () and bool(jnp.isfinite(loss))
        assert bool(jnp.all(jnp.isfinite(start_logits)))
        assert bool(jnp.all(jnp.isfinite(end_logits)))

    # small config: exercises the full-slab attention fallback (heads too narrow
    # to form a 128-lane group)
    cfg_small = dict(
        vocab_size=32, hidden_size=32, num_hidden_layers=2,
        num_attention_heads=4, intermediate_size=64,
        max_position_embeddings=16, type_vocab_size=2)
    run_case(cfg_small, S=8, B=2, seed=0)

    # second config: exercises the lane-dense grouped attention path
    # (4 heads x dh=32 -> 128-wide column blocks read straight from the QKV slab)
    cfg_grouped = dict(
        vocab_size=32, hidden_size=128, num_hidden_layers=1,
        num_attention_heads=4, intermediate_size=256,
        max_position_embeddings=16, type_vocab_size=2)
    run_case(cfg_grouped, S=8, B=2, seed=1)

    print("KERNEL_OK")
</pallas_src>

<mosaic_0001>
module attributes {stable_mosaic.version = 11 : i64} {
  func.func @_layernorm_kernel(%arg0: i32, %arg1: memref<8x32xf32, #tpu.memory_space<vmem>>, %arg2: memref<1x32xf32, #tpu.memory_space<vmem>>, %arg3: memref<1x32xf32, #tpu.memory_space<vmem>>, %arg4: memref<8x32xf32, #tpu.memory_space<vmem>>) attributes {dimension_semantics = [#tpu.dimension_semantics<parallel>], iteration_bounds = array<i64: 2>, scalar_prefetch = 0 : i64, scratch_operands = 0 : i64, tpu.core_type = #tpu.core_type<tc>, window_params = [{transform_indices = @transform_0, window_bounds = array<i64: 8, 32>}, {pipeline_mode = #tpu.pipeline_mode<synchronous>, transform_indices = @transform_1, window_bounds = array<i64: 1, 32>}, {pipeline_mode = #tpu.pipeline_mode<synchronous>, transform_indices = @transform_2, window_bounds = array<i64: 1, 32>}, {transform_indices = @transform_3, window_bounds = array<i64: 8, 32>}]} {
    %c0 = arith.constant 0 : index
    %c0_0 = arith.constant 0 : index
    %0 = vector.load %arg1[%c0, %c0_0] : memref<8x32xf32, #tpu.memory_space<vmem>>, vector<8x32xf32>
    %cst = arith.constant dense<0.000000e+00> : vector<8xf32>
    %1 = vector.multi_reduction <add>, %0, %cst [1] : vector<8x32xf32> to vector<8xf32>
    %2 = vector.shape_cast %1 : vector<8xf32> to vector<8x1xf32>
    %cst_1 = arith.constant 3.200000e+01 : f32
    %3 = vector.broadcast %cst_1 : f32 to vector<8x1xf32>
    %4 = arith.divf %2, %3 : vector<8x1xf32>
    %5 = vector.broadcast %4 : vector<8x1xf32> to vector<8x32xf32>
    %6 = arith.subf %0, %5 : vector<8x32xf32>
    %7 = arith.mulf %6, %6 : vector<8x32xf32>
    %cst_2 = arith.constant dense<0.000000e+00> : vector<8xf32>
    %8 = vector.multi_reduction <add>, %7, %cst_2 [1] : vector<8x32xf32> to vector<8xf32>
    %9 = vector.shape_cast %8 : vector<8xf32> to vector<8x1xf32>
    %cst_3 = arith.constant 3.200000e+01 : f32
    %10 = vector.broadcast %cst_3 : f32 to vector<8x1xf32>
    %11 = arith.divf %9, %10 : vector<8x1xf32>
    %12 = vector.broadcast %4 : vector<8x1xf32> to vector<8x32xf32>
    %13 = arith.subf %0, %12 : vector<8x32xf32>
    %cst_4 = arith.constant 9.99999996E-13 : f32
    %14 = vector.broadcast %cst_4 : f32 to vector<8x1xf32>
    %15 = arith.addf %11, %14 : vector<8x1xf32>
    %16 = math.rsqrt %15 : vector<8x1xf32>
    %17 = vector.broadcast %16 : vector<8x1xf32> to vector<8x32xf32>
    %18 = arith.mulf %13, %17 : vector<8x32xf32>
    %c0_5 = arith.constant 0 : index
    %c0_6 = arith.constant 0 : index
    %19 = vector.load %arg2[%c0_5, %c0_6] : memref<1x32xf32, #tpu.memory_space<vmem>>, vector<1x32xf32>
    %20 = vector.broadcast %19 : vector<1x32xf32> to vector<8x32xf32>
    %21 = arith.mulf %18, %20 : vector<8x32xf32>
    %c0_7 = arith.constant 0 : index
    %c0_8 = arith.constant 0 : index
    %22 = vector.load %arg3[%c0_7, %c0_8] : memref<1x32xf32, #tpu.memory_space<vmem>>, vector<1x32xf32>
    %23 = vector.broadcast %22 : vector<1x32xf32> to vector<8x32xf32>
    %24 = arith.addf %21, %23 : vector<8x32xf32>
    %c0_9 = arith.constant 0 : index
    %c0_10 = arith.constant 0 : index
    %25 = vector.load %arg4[%c0_9, %c0_10] : memref<8x32xf32, #tpu.memory_space<vmem>>, vector<8x32xf32>
    tpu.vector_store %arg4[%c0_9, %c0_10], %24 {strides = array<i32>} : memref<8x32xf32, #tpu.memory_space<vmem>>, vector<8x32xf32>,
    return
  }
  func.func @transform_0(%arg0: i32) -> (i32, i32) {
    %c0_i32 = arith.constant 0 : i32
    %c0_i32_0 = arith.constant 0 : i32
    return %arg0, %c0_i32 : i32, i32
  }
  func.func @transform_1(%arg0: i32) -> (i32, i32) {
    %c0_i32 = arith.constant 0 : i32
    %c0_i32_0 = arith.constant 0 : i32
    %c0_i32_1 = arith.constant 0 : i32
    return %c0_i32, %c0_i32_0 : i32, i32
  }
  func.func @transform_2(%arg0: i32) -> (i32, i32) {
    %c0_i32 = arith.constant 0 : i32
    %c0_i32_0 = arith.constant 0 : i32
    %c0_i32_1 = arith.constant 0 : i32
    return %c0_i32, %c0_i32_0 : i32, i32
  }
  func.func @transform_3(%arg0: i32) -> (i32, i32) {
    %c0_i32 = arith.constant 0 : i32
    %c0_i32_0 = arith.constant 0 : i32
    return %arg0, %c0_i32 : i32, i32
  }
}

module attributes {stable_mosaic.version = 11 : i64} {
  func.func @_linear_add_ln_kernel(%arg0: i32, %arg1: memref<8x32xbf16, #tpu.memory_space<vmem>>, %arg2: memref<32x32xbf16, #tpu.memory_space<vmem>>, %arg3: memref<1x32xf32, #tpu.memory_space<vmem>>, %arg4: memref<8x32xf32, #tpu.memory_space<vmem>>, %arg5: memref<1x32xf32, #tpu.memory_space<vmem>>, %arg6: memref<1x32xf32, #tpu.memory_space<vmem>>, %arg7: memref<8x32xf32, #tpu.memory_space<vmem>>) attributes {dimension_semantics = [#tpu.dimension_semantics<parallel>], iteration_bounds = array<i64: 2>, scalar_prefetch = 0 : i64, scratch_operands = 0 : i64, tpu.core_type = #tpu.core_type<tc>, window_params = [{transform_indices = @transform_0, window_bounds = array<i64: 8, 32>}, {pipeline_mode = #tpu.pipeline_mode<synchronous>, transform_indices = @transform_1, window_bounds = array<i64: 32, 32>}, {pipeline_mode = #tpu.pipeline_mode<synchronous>, transform_indices = @transform_2, window_bounds = array<i64: 1, 32>}, {transform_indices = @transform_3, window_bounds = array<i64: 8, 32>}, {pipeline_mode = #tpu.pipeline_mode<synchronous>, transform_indices = @transform_4, window_bounds = array<i64: 1, 32>}, {pipeline_mode = #tpu.pipeline_mode<synchronous>, transform_indices = @transform_5, window_bounds = array<i64: 1, 32>}, {transform_indices = @transform_6, window_bounds = array<i64: 8, 32>}]} {
    %c0 = arith.constant 0 : index
    %c0_0 = arith.constant 0 : index
    %0 = vector.load %arg1[%c0, %c0_0] : memref<8x32xbf16, #tpu.memory_space<vmem>>, vector<8x32xbf16>
    %c0_1 = arith.constant 0 : index
    %c0_2 = arith.constant 0 : index
    %1 = vector.load %arg2[%c0_1, %c0_2] : memref<32x32xbf16, #tpu.memory_space<vmem>>, vector<32x32xbf16>
    %cst = arith.constant dense<0.000000e+00> : vector<8x32xf32>
    %2 = tpu.matmul %0, %1, %cst {dimension_numbers = #tpu.dot_dimension_numbers<[1], [0], [0], [1], [0, 0, 1, 1], [], []>} : vector<8x32xbf16>, vector<32x32xbf16>, vector<8x32xf32> -> vector<8x32xf32>
    %c0_3 = arith.constant 0 : index
    %c0_4 = arith.constant 0 : index
    %3 = vector.load %arg3[%c0_3, %c0_4] : memref<1x32xf32, #tpu.memory_space<vmem>>, vector<1x32xf32>
    %4 = vector.broadcast %3 : vector<1x32xf32> to vector<8x32xf32>
    %5 = arith.addf %2, %4 : vector<8x32xf32>
    %c0_5 = arith.constant 0 : index
    %c0_6 = arith.constant 0 : index
    %6 = vector.load %arg4[%c0_5, %c0_6] : memref<8x32xf32, #tpu.memory_space<vmem>>, vector<8x32xf32>
    %7 = arith.addf %5, %6 : vector<8x32xf32>
    %cst_7 = arith.constant dense<0.000000e+00> : vector<8xf32>
    %8 = vector.multi_reduction <add>, %7, %cst_7 [1] : vector<8x32xf32> to vector<8xf32>
    %9 = vector.shape_cast %8 : vector<8xf32> to vector<8x1xf32>
    %cst_8 = arith.constant 3.200000e+01 : f32
    %10 = vector.broadcast %cst_8 : f32 to vector<8x1xf32>
    %11 = arith.divf %9, %10 : vector<8x1xf32>
    %12 = vector.broadcast %11 : vector<8x1xf32> to vector<8x32xf32>
    %13 = arith.subf %7, %12 : vector<8x32xf32>
    %14 = arith.mulf %13, %13 : vector<8x32xf32>
    %cst_9 = arith.constant dense<0.000000e+00> : vector<8xf32>
    %15 = vector.multi_reduction <add>, %14, %cst_9 [1] : vector<8x32xf32> to vector<8xf32>
    %16 = vector.shape_cast %15 : vector<8xf32> to vector<8x1xf32>
    %cst_10 = arith.constant 3.200000e+01 : f32
    %17 = vector.broadcast %cst_10 : f32 to vector<8x1xf32>
    %18 = arith.divf %16, %17 : vector<8x1xf32>
    %19 = vector.broadcast %11 : vector<8x1xf32> to vector<8x32xf32>
    %20 = arith.subf %7, %19 : vector<8x32xf32>
    %cst_11 = arith.constant 9.99999996E-13 : f32
    %21 = vector.broadcast %cst_11 : f32 to vector<8x1xf32>
    %22 = arith.addf %18, %21 : vector<8x1xf32>
    %23 = math.rsqrt %22 : vector<8x1xf32>
    %24 = vector.broadcast %23 : vector<8x1xf32> to vector<8x32xf32>
    %25 = arith.mulf %20, %24 : vector<8x32xf32>
    %c0_12 = arith.constant 0 : index
    %c0_13 = arith.constant 0 : index
    %26 = vector.load %arg5[%c0_12, %c0_13] : memref<1x32xf32, #tpu.memory_space<vmem>>, vector<1x32xf32>
    %27 = vector.broadcast %26 : vector<1x32xf32> to vector<8x32xf32>
    %28 = arith.mulf %25, %27 : vector<8x32xf32>
    %c0_14 = arith.constant 0 : index
    %c0_15 = arith.constant 0 : index
    %29 = vector.load %arg6[%c0_14, %c0_15] : memref<1x32xf32, #tpu.memory_space<vmem>>, vector<1x32xf32>
    %30 = vector.broadcast %29 : vector<1x32xf32> to vector<8x32xf32>
    %31 = arith.addf %28, %30 : vector<8x32xf32>
    %c0_16 = arith.constant 0 : index
    %c0_17 = arith.constant 0 : index
    %32 = vector.load %arg7[%c0_16, %c0_17] : memref<8x32xf32, #tpu.memory_space<vmem>>, vector<8x32xf32>
    tpu.vector_store %arg7[%c0_16, %c0_17], %31 {strides = array<i32>} : memref<8x32xf32, #tpu.memory_space<vmem>>, vector<8x32xf32>,
    return
  }
  func.func @transform_0(%arg0: i32) -> (i32, i32) {
    %c0_i32 = arith.constant 0 : i32
    %c0_i32_0 = arith.constant 0 : i32
    return %arg0, %c0_i32 : i32, i32
  }
  func.func @transform_1(%arg0: i32) -> (i32, i32) {
    %c0_i32 = arith.constant 0 : i32
    %c0_i32_0 = arith.constant 0 : i32
    %c0_i32_1 = arith.constant 0 : i32
    return %c0_i32, %c0_i32_0 : i32, i32
  }
  func.func @transform_2(%arg0: i32) -> (i32, i32) {
    %c0_i32 = arith.constant 0 : i32
    %c0_i32_0 = arith.constant 0 : i32
    %c0_i32_1 = arith.constant 0 : i32
    return %c0_i32, %c0_i32_0 : i32, i32
  }
  func.func @transform_3(%arg0: i32) -> (i32, i32) {
    %c0_i32 = arith.constant 0 : i32
    %c0_i32_0 = arith.constant 0 : i32
    return %arg0, %c0_i32 : i32, i32
  }
  func.func @transform_4(%arg0: i32) -> (i32, i32) {
    %c0_i32 = arith.constant 0 : i32
    %c0_i32_0 = arith.constant 0 : i32
    %c0_i32_1 = arith.constant 0 : i32
    return %c0_i32, %c0_i32_0 : i32, i32
  }
  func.func @transform_5(%arg0: i32) -> (i32, i32) {
    %c0_i32 = arith.constant 0 : i32
    %c0_i32_0 = arith.constant 0 : i32
    %c0_i32_1 = arith.constant 0 : i32
    return %c0_i32, %c0_i32_0 : i32, i32
  }
  func.func @transform_6(%arg0: i32) -> (i32, i32) {
    %c0_i32 = arith.constant 0 : i32
    %c0_i32_0 = arith.constant 0 : i32
    return %arg0, %c0_i32 : i32, i32
  }
}

module attributes {stable_mosaic.version = 11 : i64} {
  func.func @_linear_kernel(%arg0: i32, %arg1: memref<8x32xf32, #tpu.memory_space<vmem>>, %arg2: memref<32x96xbf16, #tpu.memory_space<vmem>>, %arg3: memref<1x96xf32, #tpu.memory_space<vmem>>, %arg4: memref<8x96xbf16, #tpu.memory_space<vmem>>) attributes {dimension_semantics = [#tpu.dimension_semantics<parallel>], iteration_bounds = array<i64: 2>, scalar_prefetch = 0 : i64, scratch_operands = 0 : i64, tpu.core_type = #tpu.core_type<tc>, window_params = [{transform_indices = @transform_0, window_bounds = array<i64: 8, 32>}, {pipeline_mode = #tpu.pipeline_mode<synchronous>, transform_indices = @transform_1, window_bounds = array<i64: 32, 96>}, {pipeline_mode = #tpu.pipeline_mode<synchronous>, transform_indices = @transform_2, window_bounds = array<i64: 1, 96>}, {transform_indices = @transform_3, window_bounds = array<i64: 8, 96>}]} {
    %c0 = arith.constant 0 : index
    %c0_0 = arith.constant 0 : index
    %0 = vector.load %arg1[%c0, %c0_0] : memref<8x32xf32, #tpu.memory_space<vmem>>, vector<8x32xf32>
    %1 = arith.truncf %0 : vector<8x32xf32> to vector<8x32xbf16>
    %c0_1 = arith.constant 0 : index
    %c0_2 = arith.constant 0 : index
    %2 = vector.load %arg2[%c0_1, %c0_2] : memref<32x96xbf16, #tpu.memory_space<vmem>>, vector<32x96xbf16>
    %cst = arith.constant dense<0.000000e+00> : vector<8x96xf32>
    %3 = tpu.matmul %1, %2, %cst {dimension_numbers = #tpu.dot_dimension_numbers<[1], [0], [0], [1], [0, 0, 1, 1], [], []>} : vector<8x32xbf16>, vector<32x96xbf16>, vector<8x96xf32> -> vector<8x96xf32>
    %c0_3 = arith.constant 0 : index
    %c0_4 = arith.constant 0 : index
    %4 = vector.load %arg3[%c0_3, %c0_4] : memref<1x96xf32, #tpu.memory_space<vmem>>, vector<1x96xf32>
    %5 = vector.broadcast %4 : vector<1x96xf32> to vector<8x96xf32>
    %6 = arith.addf %3, %5 : vector<8x96xf32>
    %7 = arith.truncf %6 : vector<8x96xf32> to vector<8x96xbf16>
    %c0_5 = arith.constant 0 : index
    %c0_6 = arith.constant 0 : index
    %8 = vector.load %arg4[%c0_5, %c0_6] : memref<8x96xbf16, #tpu.memory_space<vmem>>, vector<8x96xbf16>
    tpu.vector_store %arg4[%c0_5, %c0_6], %7 {strides = array<i32>} : memref<8x96xbf16, #tpu.memory_space<vmem>>, vector<8x96xbf16>,
    return
  }
  func.func @transform_0(%arg0: i32) -> (i32, i32) {
    %c0_i32 = arith.constant 0 : i32
    %c0_i32_0 = arith.constant 0 : i32
    return %arg0, %c0_i32 : i32, i32
  }
  func.func @transform_1(%arg0: i32) -> (i32, i32) {
    %c0_i32 = arith.constant 0 : i32
    %c0_i32_0 = arith.constant 0 : i32
    %c0_i32_1 = arith.constant 0 : i32
    return %c0_i32, %c0_i32_0 : i32, i32
  }
  func.func @transform_2(%arg0: i32) -> (i32, i32) {
    %c0_i32 = arith.constant 0 : i32
    %c0_i32_0 = arith.constant 0 : i32
    %c0_i32_1 = arith.constant 0 : i32
    return %c0_i32, %c0_i32_0 : i32, i32
  }
  func.func @transform_3(%arg0: i32) -> (i32, i32) {
    %c0_i32 = arith.constant 0 : i32
    %c0_i32_0 = arith.constant 0 : i32
    return %arg0, %c0_i32 : i32, i32
  }
}

module attributes {stable_mosaic.version = 11 : i64} {
  func.func @_attention_slab_kernel(%arg0: i32, %arg1: memref<8x96xbf16, #tpu.memory_space<vmem>>, %arg2: memref<1x1x8xf32, #tpu.memory_space<vmem>>, %arg3: memref<8x32xbf16, #tpu.memory_space<vmem>>) attributes {dimension_semantics = [#tpu.dimension_semantics<parallel>], iteration_bounds = array<i64: 2>, scalar_prefetch = 0 : i64, scratch_operands = 0 : i64, tpu.core_type = #tpu.core_type<tc>, window_params = [{transform_indices = @transform_0, window_bounds = array<i64: 8, 96>}, {transform_indices = @transform_1, window_bounds = array<i64: 1, 1, 8>}, {transform_indices = @transform_2, window_bounds = array<i64: 8, 32>}]} {
    %c0 = arith.constant 0 : index
    %c0_0 = arith.constant 0 : index
    %c0_1 = arith.constant 0 : index
    %0 = vector.load %arg2[%c0, %c0_0, %c0_1] : memref<1x1x8xf32, #tpu.memory_space<vmem>>, vector<1x1x8xf32>
    %1 = vector.shape_cast %0 : vector<1x1x8xf32> to vector<1x8xf32>
    %c0_2 = arith.constant 0 : index
    %c0_3 = arith.constant 0 : index
    %2 = vector.load %arg1[%c0_2, %c0_3] : memref<8x96xbf16, #tpu.memory_space<vmem>>, vector<8x8xbf16>
    %c0_4 = arith.constant 0 : index
    %c32 = arith.constant 32 : index
    %3 = vector.load %arg1[%c0_4, %c32] : memref<8x96xbf16, #tpu.memory_space<vmem>>, vector<8x8xbf16>
    %c0_5 = arith.constant 0 : index
    %c64 = arith.constant 64 : index
    %4 = vector.load %arg1[%c0_5, %c64] : memref<8x96xbf16, #tpu.memory_space<vmem>>, vector<8x8xbf16>
    %cst = arith.constant dense<0.000000e+00> : vector<8x8xf32>
    %5 = tpu.matmul %2, %3, %cst {dimension_numbers = #tpu.dot_dimension_numbers<[1], [1], [0], [0], [0, 0, 1, 0], [], []>} : vector<8x8xbf16>, vector<8x8xbf16>, vector<8x8xf32> -> vector<8x8xf32>
    %cst_6 = arith.constant 0.353553385 : f32
    %6 = vector.broadcast %cst_6 : f32 to vector<8x8xf32>
    %7 = arith.mulf %5, %6 : vector<8x8xf32>
    %8 = vector.broadcast %1 : vector<1x8xf32> to vector<8x8xf32>
    %9 = arith.addf %7, %8 : vector<8x8xf32>
    %cst_7 = arith.constant dense<0xFF800000> : vector<8xf32>
    %10 = vector.multi_reduction <maximumf>, %9, %cst_7 [1] : vector<8x8xf32> to vector<8xf32>
    %11 = vector.shape_cast %10 : vector<8xf32> to vector<8x1xf32>
    %12 = vector.broadcast %11 : vector<8x1xf32> to vector<8x8xf32>
    %13 = arith.subf %9, %12 : vector<8x8xf32>
    %14 = math.exp %13 : vector<8x8xf32>
    %cst_8 = arith.constant dense<0.000000e+00> : vector<8xf32>
    %15 = vector.multi_reduction <add>, %14, %cst_8 [1] : vector<8x8xf32> to vector<8xf32>
    %16 = vector.shape_cast %15 : vector<8xf32> to vector<8x1xf32>
    %17 = vector.broadcast %16 : vector<8x1xf32> to vector<8x8xf32>
    %18 = arith.divf %14, %17 : vector<8x8xf32>
    %19 = arith.truncf %18 : vector<8x8xf32> to vector<8x8xbf16>
    %cst_9 = arith.constant dense<0.000000e+00> : vector<8x8xf32>
    %20 = tpu.matmul %19, %4, %cst_9 {dimension_numbers = #tpu.dot_dimension_numbers<[1], [0], [0], [1], [0, 0, 1, 1], [], []>} : vector<8x8xbf16>, vector<8x8xbf16>, vector<8x8xf32> -> vector<8x8xf32>
    %c0_10 = arith.constant 0 : index
    %c8 = arith.constant 8 : index
    %21 = vector.load %arg1[%c0_10, %c8] : memref<8x96xbf16, #tpu.memory_space<vmem>>, vector<8x8xbf16>
    %c0_11 = arith.constant 0 : index
    %c40 = arith.constant 40 : index
    %22 = vector.load %arg1[%c0_11, %c40] : memref<8x96xbf16, #tpu.memory_space<vmem>>, vector<8x8xbf16>
    %c0_12 = arith.constant 0 : index
    %c72 = arith.constant 72 : index
    %23 = vector.load %arg1[%c0_12, %c72] : memref<8x96xbf16, #tpu.memory_space<vmem>>, vector<8x8xbf16>
    %cst_13 = arith.constant dense<0.000000e+00> : vector<8x8xf32>
    %24 = tpu.matmul %21, %22, %cst_13 {dimension_numbers = #tpu.dot_dimension_numbers<[1], [1], [0], [0], [0, 0, 1, 0], [], []>} : vector<8x8xbf16>, vector<8x8xbf16>, vector<8x8xf32> -> vector<8x8xf32>
    %cst_14 = arith.constant 0.353553385 : f32
    %25 = vector.broadcast %cst_14 : f32 to vector<8x8xf32>
    %26 = arith.mulf %24, %25 : vector<8x8xf32>
    %27 = vector.broadcast %1 : vector<1x8xf32> to vector<8x8xf32>
    %28 = arith.addf %26, %27 : vector<8x8xf32>
    %cst_15 = arith.constant dense<0xFF800000> : vector<8xf32>
    %29 = vector.multi_reduction <maximumf>, %28, %cst_15 [1] : vector<8x8xf32> to vector<8xf32>
    %30 = vector.shape_cast %29 : vector<8xf32> to vector<8x1xf32>
    %31 = vector.broadcast %30 : vector<8x1xf32> to vector<8x8xf32>
    %32 = arith.subf %28, %31 : vector<8x8xf32>
    %33 = math.exp %32 : vector<8x8xf32>
    %cst_16 = arith.constant dense<0.000000e+00> : vector<8xf32>
    %34 = vector.multi_reduction <add>, %33, %cst_16 [1] : vector<8x8xf32> to vector<8xf32>
    %35 = vector.shape_cast %34 : vector<8xf32> to vector<8x1xf32>
    %36 = vector.broadcast %35 : vector<8x1xf32> to vector<8x8xf32>
    %37 = arith.divf %33, %36 : vector<8x8xf32>
    %38 = arith.truncf %37 : vector<8x8xf32> to vector<8x8xbf16>
    %cst_17 = arith.constant dense<0.000000e+00> : vector<8x8xf32>
    %39 = tpu.matmul %38, %23, %cst_17 {dimension_numbers = #tpu.dot_dimension_numbers<[1], [0], [0], [1], [0, 0, 1, 1], [], []>} : vector<8x8xbf16>, vector<8x8xbf16>, vector<8x8xf32> -> vector<8x8xf32>
    %c0_18 = arith.constant 0 : index
    %c16 = arith.constant 16 : index
    %40 = vector.load %arg1[%c0_18, %c16] : memref<8x96xbf16, #tpu.memory_space<vmem>>, vector<8x8xbf16>
    %c0_19 = arith.constant 0 : index
    %c48 = arith.constant 48 : index
    %41 = vector.load %arg1[%c0_19, %c48] : memref<8x96xbf16, #tpu.memory_space<vmem>>, vector<8x8xbf16>
    %c0_20 = arith.constant 0 : index
    %c80 = arith.constant 80 : index
    %42 = vector.load %arg1[%c0_20, %c80] : memref<8x96xbf16, #tpu.memory_space<vmem>>, vector<8x8xbf16>
    %cst_21 = arith.constant dense<0.000000e+00> : vector<8x8xf32>
    %43 = tpu.matmul %40, %41, %cst_21 {dimension_numbers = #tpu.dot_dimension_numbers<[1], [1], [0], [0], [0, 0, 1, 0], [], []>} : vector<8x8xbf16>, vector<8x8xbf16>, vector<8x8xf32> -> vector<8x8xf32>
    %cst_22 = arith.constant 0.353553385 : f32
    %44 = vector.broadcast %cst_22 : f32 to vector<8x8xf32>
    %45 = arith.mulf %43, %44 : vector<8x8xf32>
    %46 = vector.broadcast %1 : vector<1x8xf32> to vector<8x8xf32>
    %47 = arith.addf %45, %46 : vector<8x8xf32>
    %cst_23 = arith.constant dense<0xFF800000> : vector<8xf32>
    %48 = vector.multi_reduction <maximumf>, %47, %cst_23 [1] : vector<8x8xf32> to vector<8xf32>
    %49 = vector.shape_cast %48 : vector<8xf32> to vector<8x1xf32>
    %50 = vector.broadcast %49 : vector<8x1xf32> to vector<8x8xf32>
    %51 = arith.subf %47, %50 : vector<8x8xf32>
    %52 = math.exp %51 : vector<8x8xf32>
    %cst_24 = arith.constant dense<0.000000e+00> : vector<8xf32>
    %53 = vector.multi_reduction <add>, %52, %cst_24 [1] : vector<8x8xf32> to vector<8xf32>
    %54 = vector.shape_cast %53 : vector<8xf32> to vector<8x1xf32>
    %55 = vector.broadcast %54 : vector<8x1xf32> to vector<8x8xf32>
    %56 = arith.divf %52, %55 : vector<8x8xf32>
    %57 = arith.truncf %56 : vector<8x8xf32> to vector<8x8xbf16>
    %cst_25 = arith.constant dense<0.000000e+00> : vector<8x8xf32>
    %58 = tpu.matmul %57, %42, %cst_25 {dimension_numbers = #tpu.dot_dimension_numbers<[1], [0], [0], [1], [0, 0, 1, 1], [], []>} : vector<8x8xbf16>, vector<8x8xbf16>, vector<8x8xf32> -> vector<8x8xf32>
    %c0_26 = arith.constant 0 : index
    %c24 = arith.constant 24 : index
    %59 = vector.load %arg1[%c0_26, %c24] : memref<8x96xbf16, #tpu.memory_space<vmem>>, vector<8x8xbf16>
    %c0_27 = arith.constant 0 : index
    %c56 = arith.constant 56 : index
    %60 = vector.load %arg1[%c0_27, %c56] : memref<8x96xbf16, #tpu.memory_space<vmem>>, vector<8x8xbf16>
    %c0_28 = arith.constant 0 : index
    %c88 = arith.constant 88 : index
    %61 = vector.load %arg1[%c0_28, %c88] : memref<8x96xbf16, #tpu.memory_space<vmem>>, vector<8x8xbf16>
    %cst_29 = arith.constant dense<0.000000e+00> : vector<8x8xf32>
    %62 = tpu.matmul %59, %60, %cst_29 {dimension_numbers = #tpu.dot_dimension_numbers<[1], [1], [0], [0], [0, 0, 1, 0], [], []>} : vector<8x8xbf16>, vector<8x8xbf16>, vector<8x8xf32> -> vector<8x8xf32>
    %cst_30 = arith.constant 0.353553385 : f32
    %63 = vector.broadcast %cst_30 : f32 to vector<8x8xf32>
    %64 = arith.mulf %62, %63 : vector<8x8xf32>
    %65 = vector.broadcast %1 : vector<1x8xf32> to vector<8x8xf32>
    %66 = arith.addf %64, %65 : vector<8x8xf32>
    %cst_31 = arith.constant dense<0xFF800000> : vector<8xf32>
    %67 = vector.multi_reduction <maximumf>, %66, %cst_31 [1] : vector<8x8xf32> to vector<8xf32>
    %68 = vector.shape_cast %67 : vector<8xf32> to vector<8x1xf32>
    %69 = vector.broadcast %68 : vector<8x1xf32> to vector<8x8xf32>
    %70 = arith.subf %66, %69 : vector<8x8xf32>
    %71 = math.exp %70 : vector<8x8xf32>
    %cst_32 = arith.constant dense<0.000000e+00> : vector<8xf32>
    %72 = vector.multi_reduction <add>, %71, %cst_32 [1] : vector<8x8xf32> to vector<8xf32>
    %73 = vector.shape_cast %72 : vector<8xf32> to vector<8x1xf32>
    %74 = vector.broadcast %73 : vector<8x1xf32> to vector<8x8xf32>
    %75 = arith.divf %71, %74 : vector<8x8xf32>
    %76 = arith.truncf %75 : vector<8x8xf32> to vector<8x8xbf16>
    %cst_33 = arith.constant dense<0.000000e+00> : vector<8x8xf32>
    %77 = tpu.matmul %76, %61, %cst_33 {dimension_numbers = #tpu.dot_dimension_numbers<[1], [0], [0], [1], [0, 0, 1, 1], [], []>} : vector<8x8xbf16>, vector<8x8xbf16>, vector<8x8xf32> -> vector<8x8xf32>
    %78 = tpu.concatenate %20, %39, %58, %77 in 1 : vector<8x8xf32>, vector<8x8xf32>, vector<8x8xf32>, vector<8x8xf32> -> vector<8x32xf32>
    %79 = arith.truncf %78 : vector<8x32xf32> to vector<8x32xbf16>
    %c0_34 = arith.constant 0 : index
    %c0_35 = arith.constant 0 : index
    %80 = vector.load %arg3[%c0_34, %c0_35] : memref<8x32xbf16, #tpu.memory_space<vmem>>, vector<8x32xbf16>
    tpu.vector_store %arg3[%c0_34, %c0_35], %79 {strides = array<i32>} : memref<8x32xbf16, #tpu.memory_space<vmem>>, vector<8x32xbf16>,
    return
  }
  func.func @transform_0(%arg0: i32) -> (i32, i32) {
    %c0_i32 = arith.constant 0 : i32
    %c0_i32_0 = arith.constant 0 : i32
    return %arg0, %c0_i32 : i32, i32
  }
  func.func @transform_1(%arg0: i32) -> (i32, i32, i32) {
    %c0_i32 = arith.constant 0 : i32
    %c0_i32_0 = arith.constant 0 : i32
    %c0_i32_1 = arith.constant 0 : i32
    return %arg0, %c0_i32, %c0_i32_0 : i32, i32, i32
  }
  func.func @transform_2(%arg0: i32) -> (i32, i32) {
    %c0_i32 = arith.constant 0 : i32
    %c0_i32_0 = arith.constant 0 : i32
    return %arg0, %c0_i32 : i32, i32
  }
}

module attributes {stable_mosaic.version = 11 : i64} {
  func.func @_linear_kernel(%arg0: i32, %arg1: memref<8x32xf32, #tpu.memory_space<vmem>>, %arg2: memref<32x128xbf16, #tpu.memory_space<vmem>>, %arg3: memref<1x128xf32, #tpu.memory_space<vmem>>, %arg4: memref<8x128xf32, #tpu.memory_space<vmem>>) attributes {dimension_semantics = [#tpu.dimension_semantics<parallel>], iteration_bounds = array<i64: 2>, scalar_prefetch = 0 : i64, scratch_operands = 0 : i64, tpu.core_type = #tpu.core_type<tc>, window_params = [{transform_indices = @transform_0, window_bounds = array<i64: 8, 32>}, {pipeline_mode = #tpu.pipeline_mode<synchronous>, transform_indices = @transform_1, window_bounds = array<i64: 32, 128>}, {pipeline_mode = #tpu.pipeline_mode<synchronous>, transform_indices = @transform_2, window_bounds = array<i64: 1, 128>}, {transform_indices = @transform_3, window_bounds = array<i64: 8, 128>}]} {
    %c0 = arith.constant 0 : index
    %c0_0 = arith.constant 0 : index
    %0 = vector.load %arg1[%c0, %c0_0] : memref<8x32xf32, #tpu.memory_space<vmem>>, vector<8x32xf32>
    %1 = arith.truncf %0 : vector<8x32xf32> to vector<8x32xbf16>
    %c0_1 = arith.constant 0 : index
    %c0_2 = arith.constant 0 : index
    %2 = vector.load %arg2[%c0_1, %c0_2] : memref<32x128xbf16, #tpu.memory_space<vmem>>, vector<32x128xbf16>
    %cst = arith.constant dense<0.000000e+00> : vector<8x128xf32>
    %3 = tpu.matmul %1, %2, %cst {dimension_numbers = #tpu.dot_dimension_numbers<[1], [0], [0], [1], [0, 0, 1, 1], [], []>} : vector<8x32xbf16>, vector<32x128xbf16>, vector<8x128xf32> -> vector<8x128xf32>
    %c0_3 = arith.constant 0 : index
    %c0_4 = arith.constant 0 : index
    %4 = vector.load %arg3[%c0_3, %c0_4] : memref<1x128xf32, #tpu.memory_space<vmem>>, vector<1x128xf32>
    %5 = vector.broadcast %4 : vector<1x128xf32> to vector<8x128xf32>
    %6 = arith.addf %3, %5 : vector<8x128xf32>
    %c0_5 = arith.constant 0 : index
    %c0_6 = arith.constant 0 : index
    %7 = vector.load %arg4[%c0_5, %c0_6] : memref<8x128xf32, #tpu.memory_space<vmem>>, vector<8x128xf32>
    tpu.vector_store %arg4[%c0_5, %c0_6], %6 {strides = array<i32>} : memref<8x128xf32, #tpu.memory_space<vmem>>, vector<8x128xf32>,
    return
  }
  func.func @transform_0(%arg0: i32) -> (i32, i32) {
    %c0_i32 = arith.constant 0 : i32
    %c0_i32_0 = arith.constant 0 : i32
    return %arg0, %c0_i32 : i32, i32
  }
  func.func @transform_1(%arg0: i32) -> (i32, i32) {
    %c0_i32 = arith.constant 0 : i32
    %c0_i32_0 = arith.constant 0 : i32
    %c0_i32_1 = arith.constant 0 : i32
    return %c0_i32, %c0_i32_0 : i32, i32
  }
  func.func @transform_2(%arg0: i32) -> (i32, i32) {
    %c0_i32 = arith.constant 0 : i32
    %c0_i32_0 = arith.constant 0 : i32
    %c0_i32_1 = arith.constant 0 : i32
    return %c0_i32, %c0_i32_0 : i32, i32
  }
  func.func @transform_3(%arg0: i32) -> (i32, i32) {
    %c0_i32 = arith.constant 0 : i32
    %c0_i32_0 = arith.constant 0 : i32
    return %arg0, %c0_i32 : i32, i32
  }
}

module attributes {stable_mosaic.version = 11 : i64} {
  func.func @_ffn_ln_kernel(%arg0: i32, %arg1: memref<8x32xf32, #tpu.memory_space<vmem>>, %arg2: memref<32x64xbf16, #tpu.memory_space<vmem>>, %arg3: memref<1x64xf32, #tpu.memory_space<vmem>>, %arg4: memref<64x32xbf16, #tpu.memory_space<vmem>>, %arg5: memref<1x32xf32, #tpu.memory_space<vmem>>, %arg6: memref<1x32xf32, #tpu.memory_space<vmem>>, %arg7: memref<1x32xf32, #tpu.memory_space<vmem>>, %arg8: memref<8x32xf32, #tpu.memory_space<vmem>>) attributes {dimension_semantics = [#tpu.dimension_semantics<parallel>], iteration_bounds = array<i64: 2>, scalar_prefetch = 0 : i64, scratch_operands = 0 : i64, tpu.core_type = #tpu.core_type<tc>, window_params = [{transform_indices = @transform_0, window_bounds = array<i64: 8, 32>}, {pipeline_mode = #tpu.pipeline_mode<synchronous>, transform_indices = @transform_1, window_bounds = array<i64: 32, 64>}, {pipeline_mode = #tpu.pipeline_mode<synchronous>, transform_indices = @transform_2, window_bounds = array<i64: 1, 64>}, {pipeline_mode = #tpu.pipeline_mode<synchronous>, transform_indices = @transform_3, window_bounds = array<i64: 64, 32>}, {pipeline_mode = #tpu.pipeline_mode<synchronous>, transform_indices = @transform_4, window_bounds = array<i64: 1, 32>}, {pipeline_mode = #tpu.pipeline_mode<synchronous>, transform_indices = @transform_5, window_bounds = array<i64: 1, 32>}, {pipeline_mode = #tpu.pipeline_mode<synchronous>, transform_indices = @transform_6, window_bounds = array<i64: 1, 32>}, {transform_indices = @transform_7, window_bounds = array<i64: 8, 32>}]} {
    %c0 = arith.constant 0 : index
    %c0_0 = arith.constant 0 : index
    %0 = vector.load %arg1[%c0, %c0_0] : memref<8x32xf32, #tpu.memory_space<vmem>>, vector<8x32xf32>
    %1 = arith.truncf %0 : vector<8x32xf32> to vector<8x32xbf16>
    %c0_1 = arith.constant 0 : index
    %c0_2 = arith.constant 0 : index
    %2 = vector.load %arg2[%c0_1, %c0_2] : memref<32x64xbf16, #tpu.memory_space<vmem>>, vector<32x64xbf16>
    %cst = arith.constant dense<0.000000e+00> : vector<8x64xf32>
    %3 = tpu.matmul %1, %2, %cst {dimension_numbers = #tpu.dot_dimension_numbers<[1], [0], [0], [1], [0, 0, 1, 1], [], []>} : vector<8x32xbf16>, vector<32x64xbf16>, vector<8x64xf32> -> vector<8x64xf32>
    %c0_3 = arith.constant 0 : index
    %c0_4 = arith.constant 0 : index
    %4 = vector.load %arg3[%c0_3, %c0_4] : memref<1x64xf32, #tpu.memory_space<vmem>>, vector<1x64xf32>
    %5 = vector.broadcast %4 : vector<1x64xf32> to vector<8x64xf32>
    %6 = arith.addf %3, %5 : vector<8x64xf32>
    %cst_5 = arith.constant 5.000000e-01 : f32
    %7 = vector.broadcast %cst_5 : f32 to vector<8x64xf32>
    %8 = arith.mulf %7, %6 : vector<8x64xf32>
    %cst_6 = arith.constant 0.707106769 : f32
    %9 = vector.broadcast %cst_6 : f32 to vector<8x64xf32>
    %10 = arith.mulf %6, %9 : vector<8x64xf32>
    %11 = math.erf %10 : vector<8x64xf32>
    %cst_7 = arith.constant 1.000000e+00 : f32
    %12 = vector.broadcast %cst_7 : f32 to vector<8x64xf32>
    %13 = arith.addf %12, %11 : vector<8x64xf32>
    %14 = arith.mulf %8, %13 : vector<8x64xf32>
    %15 = arith.truncf %14 : vector<8x64xf32> to vector<8x64xbf16>
    %c0_8 = arith.constant 0 : index
    %c0_9 = arith.constant 0 : index
    %16 = vector.load %arg4[%c0_8, %c0_9] : memref<64x32xbf16, #tpu.memory_space<vmem>>, vector<64x32xbf16>
    %cst_10 = arith.constant dense<0.000000e+00> : vector<8x32xf32>
    %17 = tpu.matmul %15, %16, %cst_10 {dimension_numbers = #tpu.dot_dimension_numbers<[1], [0], [0], [1], [0, 0, 1, 1], [], []>} : vector<8x64xbf16>, vector<64x32xbf16>, vector<8x32xf32> -> vector<8x32xf32>
    %c0_11 = arith.constant 0 : index
    %c0_12 = arith.constant 0 : index
    %18 = vector.load %arg5[%c0_11, %c0_12] : memref<1x32xf32, #tpu.memory_space<vmem>>, vector<1x32xf32>
    %19 = vector.broadcast %18 : vector<1x32xf32> to vector<8x32xf32>
    %20 = arith.addf %17, %19 : vector<8x32xf32>
    %21 = arith.addf %20, %0 : vector<8x32xf32>
    %cst_13 = arith.constant dense<0.000000e+00> : vector<8xf32>
    %22 = vector.multi_reduction <add>, %21, %cst_13 [1] : vector<8x32xf32> to vector<8xf32>
    %23 = vector.shape_cast %22 : vector<8xf32> to vector<8x1xf32>
    %cst_14 = arith.constant 3.200000e+01 : f32
    %24 = vector.broadcast %cst_14 : f32 to vector<8x1xf32>
    %25 = arith.divf %23, %24 : vector<8x1xf32>
    %26 = vector.broadcast %25 : vector<8x1xf32> to vector<8x32xf32>
    %27 = arith.subf %21, %26 : vector<8x32xf32>
    %28 = arith.mulf %27, %27 : vector<8x32xf32>
    %cst_15 = arith.constant dense<0.000000e+00> : vector<8xf32>
    %29 = vector.multi_reduction <add>, %28, %cst_15 [1] : vector<8x32xf32> to vector<8xf32>
    %30 = vector.shape_cast %29 : vector<8xf32> to vector<8x1xf32>
    %cst_16 = arith.constant 3.200000e+01 : f32
    %31 = vector.broadcast %cst_16 : f32 to vector<8x1xf32>
    %32 = arith.divf %30, %31 : vector<8x1xf32>
    %33 = vector.broadcast %25 : vector<8x1xf32> to vector<8x32xf32>
    %34 = arith.subf %21, %33 : vector<8x32xf32>
    %cst_17 = arith.constant 9.99999996E-13 : f32
    %35 = vector.broadcast %cst_17 : f32 to vector<8x1xf32>
    %36 = arith.addf %32, %35 : vector<8x1xf32>
    %37 = math.rsqrt %36 : vector<8x1xf32>
    %38 = vector.broadcast %37 : vector<8x1xf32> to vector<8x32xf32>
    %39 = arith.mulf %34, %38 : vector<8x32xf32>
    %c0_18 = arith.constant 0 : index
    %c0_19 = arith.constant 0 : index
    %40 = vector.load %arg6[%c0_18, %c0_19] : memref<1x32xf32, #tpu.memory_space<vmem>>, vector<1x32xf32>
    %41 = vector.broadcast %40 : vector<1x32xf32> to vector<8x32xf32>
    %42 = arith.mulf %39, %41 : vector<8x32xf32>
    %c0_20 = arith.constant 0 : index
    %c0_21 = arith.constant 0 : index
    %43 = vector.load %arg7[%c0_20, %c0_21] : memref<1x32xf32, #tpu.memory_space<vmem>>, vector<1x32xf32>
    %44 = vector.broadcast %43 : vector<1x32xf32> to vector<8x32xf32>
    %45 = arith.addf %42, %44 : vector<8x32xf32>
    %c0_22 = arith.constant 0 : index
    %c0_23 = arith.constant 0 : index
    %46 = vector.load %arg8[%c0_22, %c0_23] : memref<8x32xf32, #tpu.memory_space<vmem>>, vector<8x32xf32>
    tpu.vector_store %arg8[%c0_22, %c0_23], %45 {strides = array<i32>} : memref<8x32xf32, #tpu.memory_space<vmem>>, vector<8x32xf32>,
    return
  }
  func.func @transform_0(%arg0: i32) -> (i32, i32) {
    %c0_i32 = arith.constant 0 : i32
    %c0_i32_0 = arith.constant 0 : i32
    return %arg0, %c0_i32 : i32, i32
  }
  func.func @transform_1(%arg0: i32) -> (i32, i32) {
    %c0_i32 = arith.constant 0 : i32
    %c0_i32_0 = arith.constant 0 : i32
    %c0_i32_1 = arith.constant 0 : i32
    return %c0_i32, %c0_i32_0 : i32, i32
  }
  func.func @transform_2(%arg0: i32) -> (i32, i32) {
    %c0_i32 = arith.constant 0 : i32
    %c0_i32_0 = arith.constant 0 : i32
    %c0_i32_1 = arith.constant 0 : i32
    return %c0_i32, %c0_i32_0 : i32, i32
  }
  func.func @transform_3(%arg0: i32) -> (i32, i32) {
    %c0_i32 = arith.constant 0 : i32
    %c0_i32_0 = arith.constant 0 : i32
    %c0_i32_1 = arith.constant 0 : i32
    return %c0_i32, %c0_i32_0 : i32, i32
  }
  func.func @transform_4(%arg0: i32) -> (i32, i32) {
    %c0_i32 = arith.constant 0 : i32
    %c0_i32_0 = arith.constant 0 : i32
    %c0_i32_1 = arith.constant 0 : i32
    return %c0_i32, %c0_i32_0 : i32, i32
  }
  func.func @transform_5(%arg0: i32) -> (i32, i32) {
    %c0_i32 = arith.constant 0 : i32
    %c0_i32_0 = arith.constant 0 : i32
    %c0_i32_1 = arith.constant 0 : i32
    return %c0_i32, %c0_i32_0 : i32, i32
  }
  func.func @transform_6(%arg0: i32) -> (i32, i32) {
    %c0_i32 = arith.constant 0 : i32
    %c0_i32_0 = arith.constant 0 : i32
    %c0_i32_1 = arith.constant 0 : i32
    return %c0_i32, %c0_i32_0 : i32, i32
  }
  func.func @transform_7(%arg0: i32) -> (i32, i32) {
    %c0_i32 = arith.constant 0 : i32
    %c0_i32_0 = arith.constant 0 : i32
    return %arg0, %c0_i32 : i32, i32
  }
}

</mosaic_0001>

<bundles_post_ra>
// kernel: bert_qa_forward.10
= control target key start
LH: loop header
LB: loop body
LE: loop exit
PB: predicated region body
PF: predicated region fallthrough
CT: control target
= control target key end

     0   :  { %s301_s12 = smov 0   ;;  %s327_s0 = inlined_call_operand.vmem [shape: f32[16,32], index: 0, kind: input, shape index: {}]   ;;  %s328_s1 = inlined_call_operand.vmem [shape: f32[1,32], index: 1, kind: input, shape index: {}]   ;;  %s329_s2 = inlined_call_operand.vmem [shape: f32[1,32], index: 2, kind: input, shape index: {}]   ;;  %s330_s3 = inlined_call_operand.vmem [shape: f32[16,32], index: 3, kind: output, shape index: {}]  }
   0x1 LB: > { %s252_s13 = sadd.s32 4294967295, %s279_s12   ;;  %p256_p0 = scmp.ge.s32.totalorder %s279_s12, 1  ;;  %s279_s12 = sphi %s301_s12, %s13_s12  }
   0x2   : > { %p136_p1 = scmp.lt.s32.totalorder %s279_s12, 3 }
   0x4   : > { %p137_p2 = pnand %p256_p0, %p136_p1 }
   0x5   : > { %p158_p3 = scmp.lt.s32.totalorder (!%p137_p2), %s252_s13, 1  ;;  %vm167_vm0 = vcmask (!%p137_p2), 261120   ;;  %v259_v11 = vld [vmem:[%s328_s1] ss:$0 sm:$0xff] (!%p137_p2) }
   0x6   : > { %140 = sbr.rel (%p137_p2) target bundleno = 331 (0x14b), region = 32  ;;  %v260_v13 = vld [vmem:[%s329_s2] ss:$0 sm:$0xff] (!%p137_p2) }
   0xd   : > { %s332_s13 = smov (!%p158_p3, %s252_s13), 1 }
   0xe   : > { %s257_s14 = sshll.u32 %s332_s13, 3 }
   0xf   : > { %s161_s17 = scalar_lea.vmem %s327_s0, %s257_s14  ;;  %s165_s24 = scalar_lea.vmem %s330_s3, %s257_s14 }
  0x10   : > { %v166_v0 = vld [vmem:[%s161_s17] sm:$0xff] }
  0x11   : > { %v168_v1 = vsel %vm167_vm0, %v166_v0, 0.0 }
  0x12   : > { %169 = vadd.xlane.f32.xlu0 %v168_v1 }
  0x9f   : > { %v170_v2 = vpop.xlane.xlu0 %169 }
  0xa0   : > { %v172_v3 = vmul.f32 0.03125, %v170_v2 }
  0xa2   : > { %v173_v4 = vsub.f32 %v166_v0, %v172_v3 }
  0xa4   : > { %v174_v5 = vmul.f32 %v173_v4, %v173_v4 }
  0xa6   : > { %v175_v6 = vsel %vm167_vm0, %v174_v5, 0.0 }
  0xa7   : > { %176 = vadd.xlane.f32.xlu0 %v175_v6 }
 0x134   : > { %v177_v7 = vpop.xlane.xlu0 %176 }
 0x135   : > { %v178_v8 = vmul.f32 0.03125, %v177_v7 }
 0x137   : > { %v179_v9 = vadd.f32 1e-12, %v178_v8 }
 0x139   : > { %271 = vrsqrt.f32 %v179_v9 }
 0x143   : > { %v272_v10 = vpop.eup %271 }
 0x144   : > { %v181_v12 = vmul.f32 %v272_v10, %v173_v4 }
 0x146   : > { %v189_v14 = vmul.f32 %v259_v11, %v181_v12 }
 0x148   : > { %v197_v15 = vadd.f32 %v260_v13, %v189_v14 }
 0x14a   : > { %198 = vst.msk [vmem:[%s165_s24] sm:$0xff] %vm167_vm0, %v197_v15 }
 0x14b PF: > { %s13_s12 = sadd.s32 1, %s279_s12  }
 0x14c   : > { %p10_p4 = scmp.ge.s32.totalorder %s13_s12, 4  }
 0x14e   :  { %12 = sbr.rel (!%p10_p4) target bundleno = 1 (0x1), region = 62 }

// kernel: bert_qa_forward.13
= control target key start
LH: loop header
LB: loop body
LE: loop exit
PB: predicated region body
PF: predicated region fallthrough
CT: control target
= control target key end

     0   :  { %s517_s21 = smov 0   ;;  %s560_s0 = inlined_call_operand.vmem [shape: bf16[16,32], index: 0, kind: input, shape index: {}]   ;;  %s561_s1 = inlined_call_operand.vmem [shape: bf16[32,32], index: 1, kind: input, shape index: {}]   ;;  %s562_s2 = inlined_call_operand.vmem [shape: f32[1,32], index: 2, kind: input, shape index: {}]   ;;  %s563_s3 = inlined_call_operand.vmem [shape: f32[16,32], index: 3, kind: input, shape index: {}]   ;;  %s564_s4 = inlined_call_operand.vmem [shape: f32[1,32], index: 4, kind: input, shape index: {}]   ;;  %s565_s5 = inlined_call_operand.vmem [shape: f32[1,32], index: 5, kind: input, shape index: {}]   ;;  %s566_s6 = inlined_call_operand.vmem [shape: f32[16,32], index: 6, kind: output, shape index: {}]  }
   0x1 LB: > { %s431_s22 = sadd.s32 4294967295, %s478_s21   ;;  %p435_p0 = scmp.ge.s32.totalorder %s478_s21, 1  ;;  %s478_s21 = sphi %s517_s21, %s16_s21  }
   0x2   : > { %p220_p1 = scmp.lt.s32.totalorder %s478_s21, 3 }
   0x4   : > { %p221_p2 = pnand %p435_p0, %p220_p1 }
   0x5   : > { %v468_v0 = vld [vmem:[%s561_s1] sm:$0xff] (!%p221_p2)   ;;  %v480_v1 = vmov (!%p221_p2), 0.0   ;;  %v469_v2 = vld [vmem:[%s561_s1 + $0x8] sm:$0xff] (!%p221_p2)   ;;  %vm481_vm0 = vmmov (!%p221_p2), 0   ;;  %p252_p3 = scmp.lt.s32.totalorder (!%p221_p2), %s431_s22, 1  ;;  %vm289_vm1 = vcmask (!%p221_p2), 261120  }
   0x6   : > { %224 = sbr.rel (%p221_p2) target bundleno = 547 (0x223), region = 44  ;;  %450 = vmatprep.subr.bf16.mxu0 (!%p221_p2), %v480_v1  ;;  %454 = vmatprep.mubr.msk.bf16.mxu0 (!%p221_p2), %vm481_vm0, %v480_v1  ;;  %v439_v4 = vld [vmem:[%s562_s2] ss:$0 sm:$0xff] (!%p221_p2) }
   0x7   : > { %451 = vmatpush3.bf16.msra.mxu0 (!%p221_p2), %v468_v0  ;;  %v443_v22 = vld [vmem:[%s564_s4] ss:$0 sm:$0xff] (!%p221_p2) }
   0x8   : > { %452 = vmatprep.subr.bf16.mxu0 (!%p221_p2), %v480_v1  ;;  %v444_v24 = vld [vmem:[%s565_s5] ss:$0 sm:$0xff] (!%p221_p2) }
   0xb   : > { %453 = vmatpush3.bf16.msra.mxu0 (!%p221_p2), %v469_v2 }
   0xd   : > { %s568_s22 = smov (!%p252_p3, %s431_s22), 1 }
   0xe   : > { %s436_s27 = sshll.u32 %s568_s22, 2  ;;  %s437_s7 = sshll.u32 %s568_s22, 3 }
   0xf   : > { %s255_s30 = scalar_lea.vmem %s560_s0, %s436_s27  ;;  %s259_s10 = scalar_lea.vmem %s563_s3, %s437_s7 }
  0x10   : > { %v265_v3 = vld [vmem:[%s255_s30] sm:$0xf]  ;;  %s263_s19 = scalar_lea.vmem %s566_s6, %s437_s7 }
  0x11   : > { %455 = vmatmul.mubr.msk.bf16.vlgmr.msra.gmra.mrb[0].mxu0 %vm289_vm1, %v265_v3  ;;  %v333_v6 = vld [vmem:[%s259_s10] sm:$0xff] }
  0xe4   : > { %v327_v5 = vpop.f32.mrb[0].mxu0 }
  0xe5   : > { %v328_v7 = vadd.f32 %v439_v4, %v327_v5  ;;  %v456_v8 = vpop.f32.mrb[1].mxu0 }
  0xe6   : > { %v330_v9 = vpop.f32.mrb[2].mxu0 }
  0xe7   : > { %v457_v10 = vpop.f32.mrb[3].mxu0  ;;  %v334_v11 = vadd.f32 %v333_v6, %v328_v7 }
  0xe9   : > { %v335_v12 = vsel %vm289_vm1, %v334_v11, 0.0 }
  0xea   : > { %336 = vadd.xlane.f32.xlu0 %v335_v12 }
 0x177   : > { %v337_v13 = vpop.xlane.xlu0 %336 }
 0x178   : > { %v339_v14 = vmul.f32 0.03125, %v337_v13 }
 0x17a   : > { %v340_v15 = vsub.f32 %v334_v11, %v339_v14 }
 0x17c   : > { %v341_v16 = vmul.f32 %v340_v15, %v340_v15 }
 0x17e   : > { %v342_v17 = vsel %vm289_vm1, %v341_v16, 0.0 }
 0x17f   : > { %343 = vadd.xlane.f32.xlu0 %v342_v17 }
 0x20c   : > { %v344_v18 = vpop.xlane.xlu0 %343 }
 0x20d   : > { %v345_v19 = vmul.f32 0.03125, %v344_v18 }
 0x20f   : > { %v346_v20 = vadd.f32 1e-12, %v345_v19 }
 0x211   : > { %470 = vrsqrt.f32 %v346_v20 }
 0x21b   : > { %v471_v21 = vpop.eup %470 }
 0x21c   : > { %v348_v23 = vmul.f32 %v471_v21, %v340_v15 }
 0x21e   : > { %v356_v25 = vmul.f32 %v443_v22, %v348_v23 }
 0x220   : > { %v364_v26 = vadd.f32 %v444_v24, %v356_v25 }
 0x222   : > { %365 = vst.msk [vmem:[%s263_s19] sm:$0xff] %vm289_vm1, %v364_v26 }
 0x223 PF: > { %s16_s21 = sadd.s32 1, %s478_s21  }
 0x224   : > { %p13_p4 = scmp.ge.s32.totalorder %s16_s21, 4  }
 0x226   :  { %15 = sbr.rel (!%p13_p4) target bundleno = 1 (0x1), region = 77 }

// kernel: bert_qa_forward.11
= control target key start
LH: loop header
LB: loop body
LE: loop exit
PB: predicated region body
PF: predicated region fallthrough
CT: control target
= control target key end

     0   :  { %s358_s12 = smov 0   ;;  %s384_s0 = inlined_call_operand.vmem [shape: f32[16,32], index: 0, kind: input, shape index: {}]   ;;  %s385_s1 = inlined_call_operand.vmem [shape: bf16[32,96], index: 1, kind: input, shape index: {}]   ;;  %s386_s2 = inlined_call_operand.vmem [shape: f32[1,96], index: 2, kind: input, shape index: {}]   ;;  %s387_s3 = inlined_call_operand.vmem [shape: bf16[16,96], index: 3, kind: output, shape index: {}]  }
   0x1 LB: > { %s292_s13 = sadd.s32 4294967295, %s334_s12   ;;  %p296_p0 = scmp.ge.s32.totalorder %s334_s12, 1  ;;  %s334_s12 = sphi %s358_s12, %s13_s12  }
   0x2   : > { %p136_p1 = scmp.lt.s32.totalorder %s334_s12, 3 }
   0x4   : > { %p137_p2 = pnand %p296_p0, %p136_p1 }
   0x5   : > { %v326_v0 = vld [vmem:[%s385_s1] sm:$0xff] (!%p137_p2)   ;;  %v336_v1 = vmov (!%p137_p2), 0.0   ;;  %v327_v2 = vld [vmem:[%s385_s1 + $0x8] sm:$0xff] (!%p137_p2)   ;;  %vm337_vm0 = vmmov (!%p137_p2), 0   ;;  %p158_p3 = scmp.lt.s32.totalorder (!%p137_p2), %s292_s13, 1  ;;  %vm192_vm1 = vcmask (!%p137_p2), 261120  }
   0x6   : > { %140 = sbr.rel (%p137_p2) target bundleno = 236 (0xec), region = 32  ;;  %308 = vmatprep.subr.bf16.mxu0 (!%p137_p2), %v336_v1  ;;  %312 = vmatprep.mubr.msk.bf16.mxu0 (!%p137_p2), %vm337_vm0, %v336_v1  ;;  %v299_v5 = vld [vmem:[%s386_s2] ss:$0 sm:$0xff] (!%p137_p2)  ;;  %vm237_vm2 = vcmask (!%p137_p2), 781312  }
   0x7   : > { %309 = vmatpush3.bf16.msra.mxu0 (!%p137_p2), %v326_v0 }
   0x8   : > { %310 = vmatprep.subr.bf16.mxu0 (!%p137_p2), %v336_v1 }
   0xb   : > { %311 = vmatpush3.bf16.msra.mxu0 (!%p137_p2), %v327_v2 }
   0xd   : > { %s389_s13 = smov (!%p158_p3, %s292_s13), 1 }
   0xe   : > { %s297_s18 = sshll.u32 %s389_s13, 3  ;;  %s298_s24 = sshll.u32 %s389_s13, 2 }
   0xf   : > { %s161_s21 = scalar_lea.vmem %s384_s0, %s297_s18  ;;  %s165_s27 = scalar_lea.vmem %s387_s3, %s298_s24 }
  0x10   : > { %v167_v3 = vld [vmem:[%s161_s21] sm:$0xff] }
  0x11   : > { %v168_v4 = vpack.c.bf16 %v167_v3, %v167_v3 }
  0x13   : > { %313 = vmatmul.mubr.msk.bf16.vlgmr.msra.gmra.mrb[0].mxu0 %vm192_vm1, %v168_v4 }
  0xe6   : > { %v230_v6 = vpop.f32.mrb[0].mxu0 }
  0xe7   : > { %v231_v7 = vadd.f32 %v299_v5, %v230_v6  ;;  %v314_v8 = vpop.f32.mrb[1].mxu0 }
  0xe8   : > { %v233_v9 = vpop.f32.mrb[2].mxu0 }
  0xe9   : > { %v236_v10 = vpack.c.bf16 %v231_v7, %v231_v7  ;;  %v315_v11 = vpop.f32.mrb[3].mxu0 }
  0xeb   : > { %238 = vst.msk [vmem:[%s165_s27] sm:$0xf] %vm237_vm2, %v236_v10 }
  0xec PF: > { %s13_s12 = sadd.s32 1, %s334_s12  }
  0xed   : > { %p10_p4 = scmp.ge.s32.totalorder %s13_s12, 4  }
  0xef   :  { %12 = sbr.rel (!%p10_p4) target bundleno = 1 (0x1), region = 62 }

// kernel: bert_qa_forward.12
= control target key start
LH: loop header
LB: loop body
LE: loop exit
PB: predicated region body
PF: predicated region fallthrough
CT: control target
= control target key end

     0   :  { %s858_s9 = smov 0   ;;  %s957_s0 = inlined_call_operand.vmem [shape: bf16[16,96], index: 0, kind: input, shape index: {}]   ;;  %s958_s1 = inlined_call_operand.vmem [shape: f32[2,1,8], index: 1, kind: input, shape index: {}]   ;;  %s959_s2 = inlined_call_operand.vmem [shape: bf16[16,32], index: 2, kind: output, shape index: {}]  }
   0x1 LB: > { %s695_s10 = sadd.s32 4294967295, %s825_s9   ;;  %p699_p0 = scmp.ge.s32.totalorder %s825_s9, 1  ;;  %s825_s9 = sphi %s858_s9, %s12_s9  }
   0x2   : > { %p119_p1 = scmp.lt.s32.totalorder %s825_s9, 3 }
   0x4   : > { %p120_p2 = pnand %p699_p0, %p119_p1 }
   0x5   : > { %p142_p3 = scmp.lt.s32.totalorder (!%p120_p2), %s695_s10, 1  ;;  %v827_v0 = vmov (!%p120_p2), 0.0   ;;  %vm828_vm0 = vmmov (!%p120_p2), 0   ;;  %s829_s15 = smov (!%p120_p2), 96   ;;  %vm161_vm1 = vcmask (!%p120_p2), 64512   ;;  %vm233_vm2 = vcmask (!%p120_p2), 1043456  }
   0x6   : > { %123 = sbr.rel (%p120_p2) target bundleno = 1606 (0x646), region = 28  ;;  %730 = vmatprep.subr.bf16.mxu0 (!%p120_p2), %v827_v0  ;;  %732 = vmatprep.mubr.msk.bf16.mxu0 (!%p120_p2), %vm828_vm0, %v827_v0  ;;  %s830_s16 = smov (!%p120_p2), 64   ;;  %vm626_vm3 = vcmask (!%p120_p2), 130048   ;;  %vm628_vm4 = vcmask (!%p120_p2), 195584   ;;  %vm631_vm5 = vcmask (!%p120_p2), 257024  }
   0x7   : > { %736 = vmatprep.subr.bf16.mxu1 (!%p120_p2), %v827_v0  ;;  %738 = vmatprep.mubr.msk.bf16.mxu1 (!%p120_p2), %vm828_vm0, %v827_v0  ;;  %s831_s17 = smov (!%p120_p2), 88   ;;  %s832_s21 = smov (!%p120_p2), 72  }
   0x8   : > { %s833_s22 = smov (!%p120_p2), 120   ;;  %s834_s23 = smov (!%p120_p2), 80  }
   0x9   : > { %s835_s24 = smov (!%p120_p2), 112   ;;  %s836_s25 = smov (!%p120_p2), 104  }
   0xa   : > { %s837_s26 = smov (!%p120_p2), 56   ;;  %s838_s27 = smov (!%p120_p2), 48  }
   0xb   : > { %s839_s28 = smov (!%p120_p2), 40   ;;  %s840_s29 = smov (!%p120_p2), 8  }
   0xc   : > { %s841_s30 = smov (!%p120_p2), 16   ;;  %s842_s3 = smov (!%p120_p2), 24  }
   0xd   : > { %s961_s10 = smov (!%p142_p3, %s695_s10), 1 }
   0xe   : > { %s700_s11 = sshll.u32 %s961_s10, 2  ;;  %s148_s20 = scalar_lea.vmem %s958_s1, %s961_s10 }
   0xf   : > { %s145_s14 = scalar_lea.vmem %s957_s0, %s700_s11  ;;  %v894_v6 = vld [vmem:[%s148_s20] ss:$0 sm:$0xff]  ;;  %s152_s6 = scalar_lea.vmem %s959_s2, %s700_s11 }
  0x10   : > { %v155_v1 = vld [vmem:[%s145_s14] sm:$0xf] }
  0x11   : > { %v880_v2 = vcombine.low %v155_v1, %v155_v1 }
  0x13   : > { %159 = vrot.lane.b32.xlu0 %v880_v2, %s829_s15  ;;  %228 = vrot.lane.b32.xlu1 %v880_v2, %s830_s16 }
  0x17   : > { %279 = vrot.lane.b32.xlu1 %v880_v2, %s831_s17 }
  0x85   : > { %v160_v3 = vpop.permute.xlu0 %159  ;;  %v229_v13 = vpop.permute.xlu1 %228 }
  0x86   : > { %v166_v4 = vsel %vm161_vm1, %v160_v3, 0  ;;  %v235_v14 = vsel %vm233_vm2, %v229_v13, 0 }
  0x87   : > { %731 = vmatpush3.bf16.xpose.msra.mxu0 %v166_v4  ;;  %737 = vmatpush3.bf16.msra.mxu1 %v235_v14 }
  0x88   : > { %748 = vmatprep.subr.bf16.mxu0 %v827_v0  ;;  %742 = vmatprep.subr.bf16.mxu1 %v827_v0 }
  0x89   : > { %v280_v20 = vpop.permute.xlu1 %279 }
  0x8a   : > { %v285_v26 = vsel %vm161_vm1, %v280_v20, 0 }
  0x8e   : > { %733 = vmatmul.mubr.msk.bf16.vlgmr.msra.gmra.mrb[0].mxu0 %vm161_vm1, %v155_v1 }
  0x8f   : > { %750 = vmatprep.mubr.msk.bf16.mxu0 %vm828_vm0, %v827_v0 }
 0x161   : > { %v202_v5 = vpop.f32.mrb[0].mxu0 }
 0x162   : > { %v208_v7 = vmul.f32 0.35355338, %v202_v5  ;;  %v734_v8 = vpop.f32.mrb[1].mxu0 }
 0x163   : > { %v205_v9 = vpop.f32.mrb[2].mxu0 }
 0x164   : > { %v735_v10 = vpop.f32.mrb[3].mxu0  ;;  %v215_v11 = vadd.f32 %v894_v6, %v208_v7 }
 0x166   : > { %v216_v12 = vsel %vm161_vm1, %v215_v11, -inf }
 0x167   : > { %217 = vmax.xlane.f32.xlu0 %v216_v12 }
 0x17d   : > { %503 = vrot.lane.b32.xlu0 %v880_v2, %s832_s21 }
 0x1f4   : > { %v218_v15 = vpop.xlane.xlu0 %217 }
 0x1f5   : > { %v219_v16 = vsub.f32 %v215_v11, %v218_v15 }
 0x1f7   : > { %v220_v17 = vmul.f32 1.442695, %v219_v16 }
 0x1f8   : > { %v504_v29 = vpop.permute.xlu0 %503 }
 0x1f9   : > { %803 = vpow2.f32 %v220_v17  ;;  %v509_v31 = vsel %vm161_vm1, %v504_v29, 0 }
 0x203   : > { %v804_v18 = vpop.eup %803 }
 0x204   : > { %v222_v19 = vsel %vm161_vm1, %v804_v18, 0.0 }
 0x205   : > { %223 = vadd.xlane.f32.xlu1 %v222_v19 }
 0x216   : > { %277 = vrot.lane.b32.xlu1 %v880_v2, %s833_s22 }
 0x21a   : > { %391 = vrot.lane.b32.xlu1 %v880_v2, %s834_s23 }
 0x21e   : > { %389 = vrot.lane.b32.xlu1 %v880_v2, %s835_s24 }
 0x222   : > { %501 = vrot.lane.b32.xlu1 %v880_v2, %s836_s25 }
 0x292   : > { %v224_v21 = vpop.xlane.xlu1 %223 }
 0x293   : > { %805 = vrcp.f32 %v224_v21 }
 0x296   : > { %v278_v24 = vpop.permute.xlu1 %277 }
 0x29a   : > { %v392_v27 = vpop.permute.xlu1 %391 }
 0x29b   : > { %v397_v28 = vsel %vm161_vm1, %v392_v27, 0 }
 0x29d   : > { %v806_v22 = vpop.eup %805 }
 0x29e   : > { %v226_v23 = vmul.f32 %v806_v22, %v804_v18  ;;  %v390_v30 = vpop.permute.xlu1 %389 }
 0x2a0   : > { %v227_v25 = vpack.c.bf16 %v226_v23, %v226_v23 }
 0x2a2   : > { %739 = vmatmul.mubr.msk.bf16.vlgmr.msra.gmra.mrb[0].mxu1 %vm161_vm1, %v227_v25  ;;  %v502_v32 = vpop.permute.xlu1 %501 }
 0x2a3   : > { %743 = vmatpush3.bf16.xpose.msra.mxu1 %v285_v26  ;;  %744 = vmatprep.mubr.msk.bf16.mxu1 %vm828_vm0, %v827_v0 }
 0x2a4   : > { %754 = vmatprep.subr.bf16.mxu1 %v827_v0 }
 0x2aa   : > { %745 = vmatmul.mubr.msk.bf16.vlgmr.msra.gmra.mrb[4].mxu1 %vm161_vm1, %v278_v24 }
 0x2ab   : > { %755 = vmatpush3.bf16.xpose.msra.mxu1 %v397_v28  ;;  %756 = vmatprep.mubr.msk.bf16.mxu1 %vm828_vm0, %v827_v0 }
 0x2ac   : > { %766 = vmatprep.subr.bf16.mxu1 %v827_v0 }
 0x2b2   : > { %757 = vmatmul.mubr.msk.bf16.vlgmr.msra.gmra.mrb[8].mxu1 %vm161_vm1, %v390_v30 }
 0x2b3   : > { %767 = vmatpush3.bf16.xpose.msra.mxu1 %v509_v31  ;;  %768 = vmatprep.mubr.msk.bf16.mxu1 %vm828_vm0, %v827_v0 }
 0x2ba   : > { %769 = vmatmul.mubr.msk.bf16.vlgmr.msra.gmra.mrb[12].mxu1 %vm161_vm1, %v502_v32 }
 0x375   : > { %v921_v33 = vpop.f32.mrb[0].mxu1 }
 0x376   : > { %v740_v34 = vpop.f32.mrb[1].mxu1 }
 0x377   : > { %v274_v35 = vpop.f32.mrb[2].mxu1 }
 0x378   : > { %v741_v36 = vpop.f32.mrb[3].mxu1 }
 0x37d   : > { %v321_v37 = vpop.f32.mrb[4].mxu1 }
 0x37e   : > { %v327_v38 = vmul.f32 0.35355338, %v321_v37  ;;  %v746_v39 = vpop.f32.mrb[5].mxu1 }
 0x37f   : > { %v324_v40 = vpop.f32.mrb[6].mxu1 }
 0x380   : > { %v747_v41 = vpop.f32.mrb[7].mxu1  ;;  %v328_v42 = vadd.f32 %v894_v6, %v327_v38 }
 0x382   : > { %v329_v43 = vsel %vm161_vm1, %v328_v42, -inf }
 0x383   : > { %330 = vmax.xlane.f32.xlu1 %v329_v43 }
 0x385   : > { %v433_v44 = vpop.f32.mrb[8].mxu1 }
 0x386   : > { %v439_v45 = vmul.f32 0.35355338, %v433_v44  ;;  %v758_v46 = vpop.f32.mrb[9].mxu1 }
 0x387   : > { %v436_v47 = vpop.f32.mrb[10].mxu1 }
 0x388   : > { %v440_v48 = vadd.f32 %v894_v6, %v439_v45  ;;  %v759_v49 = vpop.f32.mrb[11].mxu1 }
 0x38a   : > { %v441_v50 = vsel %vm161_vm1, %v440_v48, -inf }
 0x38b   : > { %442 = vmax.xlane.f32.xlu0 %v441_v50 }
 0x38d   : > { %v545_v51 = vpop.f32.mrb[12].mxu1 }
 0x38e   : > { %v551_v52 = vmul.f32 0.35355338, %v545_v51  ;;  %v770_v53 = vpop.f32.mrb[13].mxu1 }
 0x38f   : > { %v548_v54 = vpop.f32.mrb[14].mxu1 }
 0x390   : > { %v552_v55 = vadd.f32 %v894_v6, %v551_v52  ;;  %v771_v56 = vpop.f32.mrb[15].mxu1 }
 0x392   : > { %v553_v57 = vsel %vm161_vm1, %v552_v55, -inf }
 0x393   : > { %554 = vmax.xlane.f32.xlu1 %v553_v57 }
 0x410   : > { %v331_v58 = vpop.xlane.xlu1 %330 }
 0x411   : > { %v332_v59 = vsub.f32 %v328_v42, %v331_v58 }
 0x413   : > { %v333_v60 = vmul.f32 1.442695, %v332_v59 }
 0x415   : > { %807 = vpow2.f32 %v333_v60 }
 0x418   : > { %v443_v6 = vpop.xlane.xlu0 %442 }
 0x419   : > { %v444_v7 = vsub.f32 %v440_v48, %v443_v6 }
 0x41b   : > { %v445_v8 = vmul.f32 1.442695, %v444_v7 }
 0x41f   : > { %v808_v61 = vpop.eup %807 }
 0x420   : > { %v555_v62 = vpop.xlane.xlu1 %554  ;;  %v335_v63 = vsel %vm161_vm1, %v808_v61, 0.0 }
 0x421   : > { %v556_v1 = vsub.f32 %v552_v55, %v555_v62  ;;  %336 = vadd.xlane.f32.xlu1 %v335_v63 }
 0x423   : > { %v557_v3 = vmul.f32 1.442695, %v556_v1 }
 0x425   : > { %809 = vpow2.f32 %v557_v3 }
 0x426   : > { %811 = vpow2.f32 %v445_v8 }
 0x42f   : > { %v810_v4 = vpop.eup %809 }
 0x430   : > { %v559_v5 = vsel %vm161_vm1, %v810_v4, 0.0  ;;  %v812_v9 = vpop.eup %811 }
 0x431   : > { %560 = vadd.xlane.f32.xlu0 %v559_v5  ;;  %v447_v10 = vsel %vm161_vm1, %v812_v9, 0.0 }
 0x432   : > { %341 = vrot.lane.b32.xlu1 %v880_v2, %s837_s26 }
 0x447   : > { %453 = vrot.lane.b32.xlu0 %v880_v2, %s838_s27 }
 0x456   : > { %448 = vadd.xlane.f32.xlu1 %v447_v10 }
 0x467   : > { %565 = vrot.lane.b32.xlu1 %v880_v2, %s839_s28 }
 0x4ae   : > { %v337_v11 = vpop.xlane.xlu1 %336 }
 0x4af   : > { %813 = vrcp.f32 %v337_v11 }
 0x4b2   : > { %v342_v12 = vpop.permute.xlu1 %341 }
 0x4b3   : > { %v347_v13 = vsel %vm233_vm2, %v342_v12, 0 }
 0x4b4   : > { %749 = vmatpush3.bf16.msra.mxu0 %v347_v13 }
 0x4b5   : > { %760 = vmatprep.subr.bf16.mxu0 %v827_v0 }
 0x4b9   : > { %v814_v14 = vpop.eup %813 }
 0x4ba   : > { %v339_v15 = vmul.f32 %v814_v14, %v808_v61 }
 0x4bc   : > { %v340_v16 = vpack.c.bf16 %v339_v15, %v339_v15 }
 0x4be   : > { %751 = vmatmul.mubr.msk.bf16.vlgmr.msra.gmra.mrb[4].mxu0 %vm161_vm1, %v340_v16  ;;  %v561_v17 = vpop.xlane.xlu0 %560 }
 0x4bf   : > { %762 = vmatprep.mubr.msk.bf16.mxu0 %vm828_vm0, %v827_v0 }
 0x4c2   : > { %v454_v18 = vpop.permute.xlu0 %453 }
 0x4c3   : > { %v459_v2 = vsel %vm233_vm2, %v454_v18, 0 }
 0x4c4   : > { %761 = vmatpush3.bf16.msra.mxu0 %v459_v2 }
 0x4c5   : > { %772 = vmatprep.subr.bf16.mxu0 %v827_v0 }
 0x4e3   : > { %v449_v19 = vpop.xlane.xlu1 %448 }
 0x4e4   : > { %815 = vrcp.f32 %v449_v19 }
 0x4e5   : > { %817 = vrcp.f32 %v561_v17 }
 0x4e7   : > { %v566_v21 = vpop.permute.xlu1 %565 }
 0x4e8   : > { %v571_v23 = vsel %vm233_vm2, %v566_v21, 0 }
 0x4ee   : > { %v816_v20 = vpop.eup %815 }
 0x4ef   : > { %v451_v22 = vmul.f32 %v816_v20, %v812_v9  ;;  %v818_v25 = vpop.eup %817 }
 0x4f0   : > { %v563_v26 = vmul.f32 %v818_v25, %v810_v4 }
 0x4f1   : > { %v452_v24 = vpack.c.bf16 %v451_v22, %v451_v22 }
 0x4f2   : > { %v564_v27 = vpack.c.bf16 %v563_v26, %v563_v26 }
 0x4f3   : > { %763 = vmatmul.mubr.msk.bf16.vlgmr.msra.gmra.mrb[8].mxu0 %vm161_vm1, %v452_v24 }
 0x4f4   : > { %773 = vmatpush3.bf16.msra.mxu0 %v571_v23  ;;  %774 = vmatprep.mubr.msk.bf16.mxu0 %vm828_vm0, %v827_v0 }
 0x4fb   : > { %775 = vmatmul.mubr.msk.bf16.vlgmr.msra.gmra.mrb[12].mxu0 %vm161_vm1, %v564_v27 }
 0x591   : > { %v383_v28 = vpop.f32.mrb[4].mxu0 }
 0x592   : > { %614 = vrot.lane.b32.xlu1 %v383_v28, %s840_s29  ;;  %v752_v29 = vpop.f32.mrb[5].mxu0 }
 0x593   : > { %v386_v30 = vpop.f32.mrb[6].mxu0 }
 0x594   : > { %v753_v31 = vpop.f32.mrb[7].mxu0 }
 0x5c6   : > { %v495_v32 = vpop.f32.mrb[8].mxu0 }
 0x5c7   : > { %618 = vrot.lane.b32.xlu0 %v495_v32, %s841_s30  ;;  %v764_v34 = vpop.f32.mrb[9].mxu0 }
 0x5c8   : > { %v498_v35 = vpop.f32.mrb[10].mxu0 }
 0x5c9   : > { %v765_v36 = vpop.f32.mrb[11].mxu0 }
 0x5ce   : > { %v607_v37 = vpop.f32.mrb[12].mxu0 }
 0x5cf   : > { %622 = vrot.lane.b32.xlu1 %v607_v37, %s842_s3  ;;  %v776_v0 = vpop.f32.mrb[13].mxu0 }
 0x5d0   : > { %v610_v38 = vpop.f32.mrb[14].mxu0 }
 0x5d1   : > { %v777_v39 = vpop.f32.mrb[15].mxu0 }
 0x604   : > { %v615_v40 = vpop.permute.xlu1 %614 }
 0x605   : > { %v625_v42 = vsel %vm161_vm1, %v921_v33, %v615_v40 }
 0x639   : > { %v619_v41 = vpop.permute.xlu0 %618 }
 0x63a   : > { %v627_v43 = vsel %vm626_vm3, %v625_v42, %v619_v41 }
 0x641   : > { %v623_v44 = vpop.permute.xlu1 %622 }
 0x642   : > { %v629_v45 = vsel %vm628_vm4, %v627_v43, %v623_v44 }
 0x643   : > { %v630_v46 = vpack.c.bf16 %v629_v45, %v629_v45 }
 0x645   : > { %632 = vst.msk [vmem:[%s152_s6] sm:$0xf] %vm631_vm5, %v630_v46 }
 0x646 PF: > { %s12_s9 = sadd.s32 1, %s825_s9  }
 0x647   : > { %p9_p4 = scmp.ge.s32.totalorder %s12_s9, 4  }
 0x649   :  { %11 = sbr.rel (!%p9_p4) target bundleno = 1 (0x1), region = 61 }

// kernel: bert_qa_forward.19
= control target key start
LH: loop header
LB: loop body
LE: loop exit
PB: predicated region body
PF: predicated region fallthrough
CT: control target
= control target key end

     0   :  { %s356_s12 = smov 0   ;;  %s382_s0 = inlined_call_operand.vmem [shape: f32[16,32], index: 0, kind: input, shape index: {}]   ;;  %s383_s1 = inlined_call_operand.vmem [shape: bf16[32,128], index: 1, kind: input, shape index: {}]   ;;  %s384_s2 = inlined_call_operand.vmem [shape: f32[1,128], index: 2, kind: input, shape index: {}]   ;;  %s385_s3 = inlined_call_operand.vmem [shape: f32[16,128], index: 3, kind: output, shape index: {}]  }
   0x1 LB: > { %s290_s13 = sadd.s32 4294967295, %s332_s12   ;;  %p294_p0 = scmp.ge.s32.totalorder %s332_s12, 1  ;;  %s332_s12 = sphi %s356_s12, %s13_s12  }
   0x2   : > { %p136_p1 = scmp.lt.s32.totalorder %s332_s12, 3 }
   0x4   : > { %p137_p2 = pnand %p294_p0, %p136_p1 }
   0x5   : > { %v324_v0 = vld [vmem:[%s383_s1] sm:$0xff] (!%p137_p2)   ;;  %v334_v1 = vmov (!%p137_p2), 0.0   ;;  %v325_v2 = vld [vmem:[%s383_s1 + $0x8] sm:$0xff] (!%p137_p2)   ;;  %vm335_vm0 = vmmov (!%p137_p2), 0   ;;  %p158_p3 = scmp.lt.s32.totalorder (!%p137_p2), %s290_s13, 1  ;;  %vm192_vm1 = vcmask (!%p137_p2), 261120  }
   0x6   : > { %140 = sbr.rel (%p137_p2) target bundleno = 234 (0xea), region = 32  ;;  %306 = vmatprep.subr.bf16.mxu0 (!%p137_p2), %v334_v1  ;;  %310 = vmatprep.mubr.msk.bf16.mxu0 (!%p137_p2), %vm335_vm0, %v334_v1  ;;  %v297_v5 = vld [vmem:[%s384_s2] ss:$0 sm:$0xff] (!%p137_p2) }
   0x7   : > { %307 = vmatpush3.bf16.msra.mxu0 (!%p137_p2), %v324_v0 }
   0x8   : > { %308 = vmatprep.subr.bf16.mxu0 (!%p137_p2), %v334_v1 }
   0xb   : > { %309 = vmatpush3.bf16.msra.mxu0 (!%p137_p2), %v325_v2 }
   0xd   : > { %s387_s13 = smov (!%p158_p3, %s290_s13), 1 }
   0xe   : > { %s295_s18 = sshll.u32 %s387_s13, 3 }
   0xf   : > { %s161_s21 = scalar_lea.vmem %s382_s0, %s295_s18  ;;  %s165_s26 = scalar_lea.vmem %s385_s3, %s295_s18 }
  0x10   : > { %v167_v3 = vld [vmem:[%s161_s21] sm:$0xff] }
  0x11   : > { %v168_v4 = vpack.c.bf16 %v167_v3, %v167_v3 }
  0x13   : > { %311 = vmatmul.mubr.msk.bf16.vlgmr.msra.gmra.mrb[0].mxu0 %vm192_vm1, %v168_v4 }
  0xe6   : > { %v230_v6 = vpop.f32.mrb[0].mxu0 }
  0xe7   : > { %v231_v7 = vadd.f32 %v297_v5, %v230_v6  ;;  %v312_v8 = vpop.f32.mrb[1].mxu0 }
  0xe8   : > { %v233_v9 = vpop.f32.mrb[2].mxu0 }
  0xe9   : > { %236 = vst [vmem:[%s165_s26] sm:$0xff] %v231_v7  ;;  %v313_v10 = vpop.f32.mrb[3].mxu0 }
  0xea PF: > { %s13_s12 = sadd.s32 1, %s332_s12  }
  0xeb   : > { %p10_p4 = scmp.ge.s32.totalorder %s13_s12, 4  }
  0xed   :  { %12 = sbr.rel (!%p10_p4) target bundleno = 1 (0x1), region = 62 }

// kernel: bert_qa_forward.14
= control target key start
LH: loop header
LB: loop body
LE: loop exit
PB: predicated region body
PF: predicated region fallthrough
CT: control target
= control target key end

     0   :  { %s637_s24 = smov 0   ;;  %s695_s0 = inlined_call_operand.vmem [shape: f32[16,32], index: 0, kind: input, shape index: {}]   ;;  %s696_s1 = inlined_call_operand.vmem [shape: bf16[32,64], index: 1, kind: input, shape index: {}]   ;;  %s697_s2 = inlined_call_operand.vmem [shape: f32[1,64], index: 2, kind: input, shape index: {}]   ;;  %s698_s3 = inlined_call_operand.vmem [shape: bf16[64,32], index: 3, kind: input, shape index: {}]   ;;  %s699_s4 = inlined_call_operand.vmem [shape: f32[1,32], index: 4, kind: input, shape index: {}]   ;;  %s700_s5 = inlined_call_operand.vmem [shape: f32[1,32], index: 5, kind: input, shape index: {}]   ;;  %s701_s6 = inlined_call_operand.vmem [shape: f32[1,32], index: 6, kind: input, shape index: {}]   ;;  %s702_s7 = inlined_call_operand.vmem [shape: f32[16,32], index: 7, kind: output, shape index: {}]  }
   0x1 LB: > { %s518_s25 = sadd.s32 4294967295, %s593_s24   ;;  %p522_p0 = scmp.ge.s32.totalorder %s593_s24, 1  ;;  %s593_s24 = sphi %s637_s24, %s17_s24  }
   0x2   : > { %p236_p1 = scmp.lt.s32.totalorder %s593_s24, 3 }
   0x4   : > { %p237_p2 = pnand %p522_p0, %p236_p1 }
   0x5   : > { %v577_v0 = vld [vmem:[%s696_s1] sm:$0xff] (!%p237_p2)   ;;  %v595_v1 = vmov (!%p237_p2), 0.0   ;;  %v578_v2 = vld [vmem:[%s696_s1 + $0x8] sm:$0xff] (!%p237_p2)   ;;  %vm596_vm0 = vmmov (!%p237_p2), 0   ;;  %p266_p3 = scmp.lt.s32.totalorder (!%p237_p2), %s518_s25, 1  ;;  %vm300_vm1 = vcmask (!%p237_p2), 261120  }
   0x6   : > { %240 = sbr.rel (%p237_p2) target bundleno = 782 (0x30e), region = 48  ;;  %547 = vmatprep.subr.bf16.mxu0 (!%p237_p2), %v595_v1  ;;  %555 = vmatprep.subr.bf16.mxu1 (!%p237_p2), %v595_v1  ;;  %v579_v5 = vld [vmem:[%s698_s3] sm:$0xff] (!%p237_p2)   ;;  %v580_v6 = vld [vmem:[%s698_s3 + $0x8] sm:$0xff] (!%p237_p2)   ;;  %v581_v7 = vld [vmem:[%s698_s3 + $0x10] sm:$0xff] (!%p237_p2)   ;;  %vm389_vm2 = vcmask (!%p237_p2), 523264  }
   0x7   : > { %548 = vmatpush3.bf16.msra.mxu0 (!%p237_p2), %v577_v0  ;;  %551 = vmatprep.mubr.msk.bf16.mxu0 (!%p237_p2), %vm596_vm0, %v595_v1  ;;  %v582_v8 = vld [vmem:[%s698_s3 + $0x18] sm:$0xff] (!%p237_p2)   ;;  %v525_v9 = vld [vmem:[%s697_s2] ss:$0 sm:$0xff] (!%p237_p2) }
   0x8   : > { %549 = vmatprep.subr.bf16.mxu0 (!%p237_p2), %v595_v1  ;;  %563 = vmatprep.mubr.msk.bf16.mxu1 (!%p237_p2), %vm596_vm0, %v595_v1  ;;  %v529_v21 = vld [vmem:[%s699_s4] ss:$0 sm:$0xff] (!%p237_p2) }
   0x9   : > { %556 = vmatpush3.bf16.msra.mxu1 (!%p237_p2), %v579_v5  ;;  %v535_v38 = vld [vmem:[%s700_s5] ss:$0 sm:$0xff] (!%p237_p2) }
   0xa   : > { %557 = vmatprep.subr.bf16.mxu1 (!%p237_p2), %v595_v1  ;;  %v536_v40 = vld [vmem:[%s701_s6] ss:$0 sm:$0xff] (!%p237_p2) }
   0xb   : > { %550 = vmatpush3.bf16.msra.mxu0 (!%p237_p2), %v578_v2 }
   0xd   : > { %s704_s25 = smov (!%p266_p3, %s518_s25), 1  ;;  %558 = vmatpush3.bf16.msra.mxu1 %v580_v6 }
   0xe   : > { %s523_s30 = sshll.u32 %s704_s25, 3  ;;  %559 = vmatprep.subr.bf16.mxu1 %v595_v1 }
   0xf   : > { %s269_s10 = scalar_lea.vmem %s695_s0, %s523_s30  ;;  %s273_s9 = scalar_lea.vmem %s702_s7, %s523_s30 }
  0x10   : > { %v275_v3 = vld [vmem:[%s269_s10] sm:$0xff] }
  0x11   : > { %v276_v4 = vpack.c.bf16 %v275_v3, %v275_v3  ;;  %560 = vmatpush3.bf16.msra.mxu1 %v581_v7 }
  0x12   : > { %561 = vmatprep.subr.bf16.mxu1 %v595_v1 }
  0x13   : > { %552 = vmatmul.mubr.msk.bf16.vlgmr.msra.gmra.mrb[0].mxu0 %vm300_vm1, %v276_v4 }
  0x15   : > { %562 = vmatpush3.bf16.msra.mxu1 %v582_v8 }
  0xe6   : > { %v338_v10 = vpop.f32.mrb[0].mxu0 }
  0xe7   : > { %v339_v11 = vadd.f32 %v525_v9, %v338_v10  ;;  %v553_v12 = vpop.f32.mrb[1].mxu0 }
  0xe8   : > { %v341_v13 = vpop.f32.mrb[2].mxu0 }
  0xe9   : > { %v345_v14 = vmul.f32 0.70710677, %v339_v11  ;;  %v554_v15 = vpop.f32.mrb[3].mxu0  ;;  %v344_v17 = vmul.f32 0.5, %v339_v11 }
  0xeb   : > { %583 = verf.f32 %v345_v14 }
  0xf5   : > { %v584_v16 = vpop.eup %583 }
  0xf6   : > { %v347_v18 = vadd.f32 1.0, %v584_v16 }
  0xf8   : > { %v348_v19 = vmul.f32 %v347_v18, %v344_v17 }
  0xfa   : > { %v349_v20 = vpack.c.bf16 %v348_v19, %v348_v19 }
  0xfc   : > { %564 = vmatmul.mubr.msk.bf16.vlgmr.msra.gmra.mrb[0].mxu1 %vm389_vm2, %v349_v20 }
 0x1cf   : > { %v427_v22 = vpop.f32.mrb[0].mxu1 }
 0x1d0   : > { %v428_v23 = vadd.f32 %v529_v21, %v427_v22  ;;  %v565_v24 = vpop.f32.mrb[1].mxu1 }
 0x1d1   : > { %v430_v25 = vpop.f32.mrb[2].mxu1 }
 0x1d2   : > { %v566_v26 = vpop.f32.mrb[3].mxu1  ;;  %v433_v27 = vadd.f32 %v428_v23, %v275_v3 }
 0x1d4   : > { %v434_v28 = vsel %vm300_vm1, %v433_v27, 0.0 }
 0x1d5   : > { %435 = vadd.xlane.f32.xlu0 %v434_v28 }
 0x262   : > { %v436_v29 = vpop.xlane.xlu0 %435 }
 0x263   : > { %v438_v30 = vmul.f32 0.03125, %v436_v29 }
 0x265   : > { %v439_v31 = vsub.f32 %v433_v27, %v438_v30 }
 0x267   : > { %v440_v32 = vmul.f32 %v439_v31, %v439_v31 }
 0x269   : > { %v441_v33 = vsel %vm300_vm1, %v440_v32, 0.0 }
 0x26a   : > { %442 = vadd.xlane.f32.xlu0 %v441_v33 }
 0x2f7   : > { %v443_v34 = vpop.xlane.xlu0 %442 }
 0x2f8   : > { %v444_v35 = vmul.f32 0.03125, %v443_v34 }
 0x2fa   : > { %v445_v36 = vadd.f32 1e-12, %v444_v35 }
 0x2fc   : > { %585 = vrsqrt.f32 %v445_v36 }
 0x306   : > { %v586_v37 = vpop.eup %585 }
 0x307   : > { %v447_v39 = vmul.f32 %v586_v37, %v439_v31 }
 0x309   : > { %v455_v41 = vmul.f32 %v535_v38, %v447_v39 }
 0x30b   : > { %v463_v42 = vadd.f32 %v536_v40, %v455_v41 }
 0x30d   : > { %464 = vst.msk [vmem:[%s273_s9] sm:$0xff] %vm300_vm1, %v463_v42 }
 0x30e PF: > { %s17_s24 = sadd.s32 1, %s593_s24  }
 0x30f   : > { %p14_p4 = scmp.ge.s32.totalorder %s17_s24, 4  }
 0x311   :  { %16 = sbr.rel (!%p14_p4) target bundleno = 1 (0x1), region = 78 }

</bundles_post_ra>
